<compile_context>
chip_gen: v6e
topology: v6e:2x2x1
jax: 0.10.0
libtpu: 0.0.40
codegen_flags: <defaults>
</compile_context>

<pallas_src>
import numpy as np
import jax
import jax.numpy as jnp
from jax.experimental import pallas as pl
from jax.experimental.pallas import tpu as pltpu


def _rup(v, m):
    return (v + m - 1) // m * m


# ----------------------------------------------------------------------------
# Kernel
# ----------------------------------------------------------------------------
def _make_kernel(H, W, TH, Ltp, Cout_p, has_shortcut, mm_dtype, dw_dtype):
    THW = TH * W

    def kernel(x_ref, rc_ref, wcat_ref, bcat_ref, wd_ref, b2_ref, w3_ref, b3_ref,
               o_ref):
        t = pl.program_id(1)                       # row-tile index
        x = x_ref[0, 0]                            # (Cin_p, Ltp), already mm dtype

        # --- fused expand (+ shortcut) 1x1 conv: one (Ccat,Cin_p)@(Cin_p,Ltp) matmul
        hx = jnp.dot(wcat_ref[...], x, preferred_element_type=jnp.float32)
        hx = hx + bcat_ref[...]                    # folded BN bias (Ccat, 1)
        if has_shortcut:
            sc = hx[:Cout_p, :]                    # shortcut Conv1x1BN(x)   (8-aligned split)
            h = hx[Cout_p:, :]                     # expand path
        else:
            h = hx
        h = jnp.clip(h, 0.0, 6.0).astype(dw_dtype)  # ReLU6

        # --- 3x3 depthwise conv (pad=1): 8 XLU lane-rolls + masked MACs, no scratch
        row = rc_ref[0:1, :]                       # (1, Ltp) tile-local padded row idx
        col = rc_ref[1:2, :]                       # (1, Ltp) column idx
        g_row = row + (t * TH - 1)                 # global image row of this lane
        wd = wd_ref[...].astype(dw_dtype)          # (Cmid_p, 9), BN scale folded
        acc = h * wd[:, 4:5]                       # center tap: always valid, no mask
        zero = jnp.zeros((), dw_dtype)
        k = 0
        for oy in (-1, 0, 1):
            for ox in (-1, 0, 1):
                if oy == 0 and ox == 0:
                    k += 1
                    continue
                off = oy * W + ox
                rolled = pltpu.roll(h, shift=(-off) % Ltp, axis=1)
                valid = None
                if ox == -1:                       # only the binding comparisons
                    valid = col >= 1
                elif ox == 1:
                    valid = col <= W - 2
                if oy == -1:
                    v = g_row >= 1
                    valid = v if valid is None else (valid & v)
                elif oy == 1:
                    v = g_row <= H - 2
                    valid = v if valid is None else (valid & v)
                tap = jnp.where(valid, rolled, zero)
                acc = acc + tap * wd[:, k:k + 1]
                k += 1
        d = jnp.clip(acc + b2_ref[...].astype(dw_dtype), 0.0, 6.0)   # BN bias + ReLU6

        # --- project 1x1 conv + BN (+ residual add); store only the TH real rows
        y = jnp.dot(w3_ref[...], d.astype(mm_dtype),
                    preferred_element_type=jnp.float32)
        y = y + b3_ref[...]
        if has_shortcut:
            y = y + sc
        o_ref[0] = y[:, W:W + THW].astype(o_ref.dtype)

    return kernel


def _choose_row_tile(H, W):
    for th in range(1, H + 1):
        if H % th == 0 and (th * W) % 128 == 0:
            return th
    return H


# ----------------------------------------------------------------------------
# Wrapper
# ----------------------------------------------------------------------------
def inverted_residual_forward(x_nchw, params, stride, *,
                              matmul_dtype=jnp.bfloat16,
                              depthwise_dtype=jnp.float32,
                              out_dtype=jnp.float32,
                              row_tile=None):
    """InvertedResidual forward.  Input/output are NCHW (PyTorch convention)."""
    B, Cin, H, W = x_nchw.shape
    Cmid = params["w1"].shape[1]
    Cout = params["w3"].shape[1]
    has_shortcut = (stride == 1)

    Cin_p, Cmid_p, Cout_p = _rup(Cin, 8), _rup(Cmid, 8), _rup(Cout, 8)
    TH = row_tile if row_tile is not None else _choose_row_tile(H, W)
    assert H % TH == 0
    nT = H // TH
    L_real = (TH + 2) * W                         # tile rows + 1-row halo each side
    Ltp = _rup(L_real, 128)                       # lane-tile aligned (safe rolls)
    THW = TH * W

    # ---- layout plumbing + BN folding (all in the wrapper) ----
    xp = jnp.pad(x_nchw.astype(jnp.float32),
                 ((0, 0), (0, Cin_p - Cin), (1, 1), (0, 0)))          # chan pad + halo
    tiles = [xp[:, :, t * TH: t * TH + TH + 2, :] for t in range(nT)]
    xt = jnp.stack(tiles, axis=1).reshape(B, nT, Cin_p, L_real)
    xt = jnp.pad(xt, ((0, 0), (0, 0), (0, 0), (0, Ltp - L_real)))
    xt = xt.astype(matmul_dtype)                  # bf16 MXU operand, cast once here

    lane = np.arange(Ltp)
    rc = jnp.asarray(np.stack([np.where(lane < L_real, lane // W, -100),
                               np.where(lane < L_real, lane % W, -100)]
                              ).astype(np.int32))                      # (2, Ltp)

    def _pad2(a, r, c):
        return jnp.pad(a, ((0, r - a.shape[0]), (0, c - a.shape[1])))

    w1t = _pad2((params["w1"] * params["s1"]).T, Cmid_p, Cin_p)        # BN scale folded
    b1c = _pad2(params["b1"].reshape(Cmid, 1), Cmid_p, 1)
    wdt = _pad2((params["wd"] * params["s2"]).T, Cmid_p, 9)
    b2c = _pad2(params["b2"].reshape(Cmid, 1), Cmid_p, 1)
    w3t = _pad2((params["w3"] * params["s3"]).T, Cout_p, Cmid_p)
    b3c = _pad2(params["b3"].reshape(Cout, 1), Cout_p, 1)
    if has_shortcut:
        wsct = _pad2((params["wsc"] * params["ssc"]).T, Cout_p, Cin_p)
        bscc = _pad2(params["bsc"].reshape(Cout, 1), Cout_p, 1)
        wcat = jnp.concatenate([wsct, w1t], axis=0)   # shortcut rows first (8-aligned)
        bcat = jnp.concatenate([bscc, b1c], axis=0)
    else:
        wcat, bcat = w1t, b1c
    wcat = wcat.astype(matmul_dtype)
    w3t = w3t.astype(matmul_dtype)
    Ccat = wcat.shape[0]

    kernel = _make_kernel(H, W, TH, Ltp, Cout_p, has_shortcut,
                          matmul_dtype, depthwise_dtype)

    ops = [rc, wcat, bcat, wdt, b2c, w3t, b3c]

    def _const(a):
        nd = a.ndim
        return pl.BlockSpec(a.shape, lambda b, t, _n=nd: (0,) * _n)

    in_specs = ([pl.BlockSpec((1, 1, Cin_p, Ltp), lambda b, t: (b, t, 0, 0))]
                + [_const(a) for a in ops])

    flops = int(2 * B * nT * Ltp * (Ccat * Cin_p + Cout_p * Cmid_p)
                + 18 * B * nT * Cmid_p * Ltp)
    bytes_accessed = int(xt.size * xt.dtype.itemsize
                         + B * Cout_p * H * W * jnp.dtype(out_dtype).itemsize
                         + sum(int(a.size * a.dtype.itemsize) for a in ops))

    y = pl.pallas_call(
        kernel,
        out_shape=jax.ShapeDtypeStruct((B, Cout_p, H * W), out_dtype),
        grid_spec=pltpu.PrefetchScalarGridSpec(
            num_scalar_prefetch=0,
            grid=(B, nT),
            in_specs=in_specs,
            out_specs=pl.BlockSpec((1, Cout_p, THW), lambda b, t: (b, 0, t)),
        ),
        compiler_params=pltpu.CompilerParams(
            dimension_semantics=("parallel", "parallel"),
            vmem_limit_bytes=32 * 1024 * 1024),
        cost_estimate=pl.CostEstimate(flops=flops, transcendentals=0,
                                      bytes_accessed=bytes_accessed),
    )(xt, *ops)

    y = y[:, :Cout, :].reshape(B, Cout, H, W)
    if stride != 1:
        # 1x1 convs / BN are pointwise in space and the pad=1 depthwise taps line up,
        # so the exact stride-s output is the stride-1 output subsampled.
        # TODO(synk): subsample inside the kernel before the project matmul.
        y = y[:, :, ::stride, ::stride]
    return y


# ----------------------------------------------------------------------------
# Deterministic parameter init (Conv bias + eval-mode BatchNorm folded to scale/shift)
# ----------------------------------------------------------------------------
def _fold_bn(conv_b, gamma, beta, mean, var, eps=1e-5):
    scale = gamma / jnp.sqrt(var + eps)
    shift = beta - mean * scale + conv_b * scale
    return scale.reshape(1, -1), shift.reshape(1, -1)


def init_params(key, in_channels, out_channels, expansion_factor):
    Cin, Cout = in_channels, out_channels
    Cmid = Cin * expansion_factor
    ks = list(jax.random.split(key, 24))

    def nrm(k, shape, s=0.1):
        return jax.random.normal(k, shape, jnp.float32) * s

    def bn(k, c):
        k1, k2, k3, k4 = jax.random.split(k, 4)
        gamma = 1.0 + nrm(k1, (c,))
        beta = nrm(k2, (c,))
        mean = nrm(k3, (c,))
        var = jnp.abs(jax.random.normal(k4, (c,), jnp.float32)) * 0.5 + 0.5
        return gamma, beta, mean, var

    p = {}
    p["w1"] = nrm(ks[0], (Cin, Cmid))
    p["s1"], p["b1"] = _fold_bn(nrm(ks[1], (Cmid,)), *bn(ks[2], Cmid))
    p["wd"] = nrm(ks[3], (3, 3, Cmid)).reshape(9, Cmid)
    p["s2"], p["b2"] = _fold_bn(nrm(ks[4], (Cmid,)), *bn(ks[5], Cmid))
    p["w3"] = nrm(ks[6], (Cmid, Cout))
    p["s3"], p["b3"] = _fold_bn(nrm(ks[7], (Cout,)), *bn(ks[8], Cout))
    p["wsc"] = nrm(ks[9], (Cin, Cout))
    p["ssc"], p["bsc"] = _fold_bn(nrm(ks[10], (Cout,)), *bn(ks[11], Cout))
    return p


# ----------------------------------------------------------------------------
# Pure-JAX (lax.conv) reference for verification
# ----------------------------------------------------------------------------
def reference_forward(x_nchw, p, stride):
    x = jnp.transpose(x_nchw, (0, 2, 3, 1)).astype(jnp.float32)   # NHWC
    Cin, Cmid = p["w1"].shape
    Cout = p["w3"].shape[1]
    dn = ("NHWC", "HWIO", "NHWC")

    h = jax.lax.conv_general_dilated(x, p["w1"].reshape(1, 1, Cin, Cmid),
                                     (1, 1), "VALID", dimension_numbers=dn)
    h = jnp.clip(h * p["s1"] + p["b1"], 0.0, 6.0)

    wd = p["wd"].reshape(3, 3, Cmid).reshape(3, 3, 1, Cmid)
    d = jax.lax.conv_general_dilated(h, wd, (stride, stride),
                                     ((1, 1), (1, 1)), dimension_numbers=dn,
                                     feature_group_count=Cmid)
    d = jnp.clip(d * p["s2"] + p["b2"], 0.0, 6.0)

    y = jax.lax.conv_general_dilated(d, p["w3"].reshape(1, 1, Cmid, Cout),
                                     (1, 1), "VALID", dimension_numbers=dn)
    y = y * p["s3"] + p["b3"]

    if stride == 1:
        sc = jax.lax.conv_general_dilated(x, p["wsc"].reshape(1, 1, Cin, Cout),
                                          (1, 1), "VALID", dimension_numbers=dn)
        y = y + (sc * p["ssc"] + p["bsc"])
    return jnp.transpose(y, (0, 3, 1, 2))   # NCHW


# ----------------------------------------------------------------------------
if __name__ == "__main__":
    B, Cin, H, W = 2, 4, 16, 16
    Cout, expansion = 8, 6          # mid_channels = Cin * expansion = 24

    key = jax.random.PRNGKey(0)
    kx, kp = jax.random.split(key)
    x = jax.random.normal(kx, (B, Cin, H, W), jnp.float32)   # NCHW, like PyTorch
    params = init_params(kp, Cin, Cout, expansion)

    ref1 = reference_forward(x, params, stride=1)

    # stride=1, f32 MXU operands (tight structural check), 2 row tiles of 8 rows
    out_f32 = jax.block_until_ready(
        inverted_residual_forward(x, params, stride=1, matmul_dtype=jnp.float32))
    assert out_f32.shape == (B, Cout, H, W), out_f32.shape
    err = float(jnp.max(jnp.abs(out_f32 - ref1)))
    assert err < 2e-3, f"stride=1 f32 max abs error {err}"

    # stride=1, default bf16 MXU operands (preferred on all chips)
    out_bf = jax.block_until_ready(inverted_residual_forward(x, params, stride=1))
    err_bf = float(jnp.max(jnp.abs(out_bf - ref1)))
    assert err_bf < 1.5e-1, f"stride=1 bf16 max abs error {err_bf}"

    # stride=2 (no shortcut)
    out_s2 = jax.block_until_ready(inverted_residual_forward(x, params, stride=2))
    ref2 = reference_forward(x, params, stride=2)
    assert out_s2.shape == (B, Cout, H // 2, W // 2), out_s2.shape
    err2 = float(jnp.max(jnp.abs(out_s2 - ref2)))
    assert err2 < 1.5e-1, f"stride=2 bf16 max abs error {err2}"

    # monolithic single-tile path (row_tile = H) also exercised
    out_m = jax.block_until_ready(
        inverted_residual_forward(x, params, stride=1,
                                  matmul_dtype=jnp.float32, row_tile=H))
    errm = float(jnp.max(jnp.abs(out_m - ref1)))
    assert errm < 2e-3, f"row_tile=H f32 max abs error {errm}"

    print("KERNEL_OK")
</pallas_src>

<mosaic_0001>
module attributes {stable_mosaic.version = 11 : i64} {
  func.func @kernel(%arg0: i32, %arg1: i32, %arg2: memref<1x1x8x256xf32, #tpu.memory_space<vmem>>, %arg3: memref<2x256xi32, #tpu.memory_space<vmem>>, %arg4: memref<32x8xf32, #tpu.memory_space<vmem>>, %arg5: memref<32x1xf32, #tpu.memory_space<vmem>>, %arg6: memref<24x9xf32, #tpu.memory_space<vmem>>, %arg7: memref<24x1xf32, #tpu.memory_space<vmem>>, %arg8: memref<8x24xf32, #tpu.memory_space<vmem>>, %arg9: memref<8x1xf32, #tpu.memory_space<vmem>>, %arg10: memref<1x8x128xf32, #tpu.memory_space<vmem>>) attributes {dimension_semantics = [#tpu.dimension_semantics<parallel>, #tpu.dimension_semantics<parallel>], iteration_bounds = array<i64: 2, 2>, scalar_prefetch = 0 : i64, scratch_operands = 0 : i64, tpu.core_type = #tpu.core_type<tc>, window_params = [{transform_indices = @transform_0, window_bounds = array<i64: 1, 1, 8, 256>}, {pipeline_mode = #tpu.pipeline_mode<synchronous>, transform_indices = @transform_1, window_bounds = array<i64: 2, 256>}, {pipeline_mode = #tpu.pipeline_mode<synchronous>, transform_indices = @transform_2, window_bounds = array<i64: 32, 8>}, {pipeline_mode = #tpu.pipeline_mode<synchronous>, transform_indices = @transform_3, window_bounds = array<i64: 32, 1>}, {pipeline_mode = #tpu.pipeline_mode<synchronous>, transform_indices = @transform_4, window_bounds = array<i64: 24, 9>}, {pipeline_mode = #tpu.pipeline_mode<synchronous>, transform_indices = @transform_5, window_bounds = array<i64: 24, 1>}, {pipeline_mode = #tpu.pipeline_mode<synchronous>, transform_indices = @transform_6, window_bounds = array<i64: 8, 24>}, {pipeline_mode = #tpu.pipeline_mode<synchronous>, transform_indices = @transform_7, window_bounds = array<i64: 8, 1>}, {transform_indices = @transform_8, window_bounds = array<i64: 1, 8, 128>}]} {
    %c0 = arith.constant 0 : index
    %c0_0 = arith.constant 0 : index
    %c0_1 = arith.constant 0 : index
    %c0_2 = arith.constant 0 : index
    %0 = vector.load %arg2[%c0, %c0_0, %c0_1, %c0_2] : memref<1x1x8x256xf32, #tpu.memory_space<vmem>>, vector<1x1x8x256xf32>
    %1 = vector.shape_cast %0 : vector<1x1x8x256xf32> to vector<8x256xf32>
    %c0_3 = arith.constant 0 : index
    %c0_4 = arith.constant 0 : index
    %2 = vector.load %arg4[%c0_3, %c0_4] : memref<32x8xf32, #tpu.memory_space<vmem>>, vector<32x8xf32>
    %cst = arith.constant dense<0.000000e+00> : vector<32x256xf32>
    %3 = tpu.matmul %2, %1, %cst {dimension_numbers = #tpu.dot_dimension_numbers<[1], [0], [0], [1], [0, 0, 1, 1], [], []>} : vector<32x8xf32>, vector<8x256xf32>, vector<32x256xf32> -> vector<32x256xf32>
    %c0_5 = arith.constant 0 : index
    %c0_6 = arith.constant 0 : index
    %4 = vector.load %arg5[%c0_5, %c0_6] : memref<32x1xf32, #tpu.memory_space<vmem>>, vector<32x1xf32>
    %5 = vector.broadcast %4 : vector<32x1xf32> to vector<32x256xf32>
    %6 = arith.addf %3, %5 : vector<32x256xf32>
    %7 = vector.extract_strided_slice %6 {offsets = [0, 0], sizes = [8, 256], strides = [1, 1]} : vector<32x256xf32> to vector<8x256xf32>
    %8 = vector.extract_strided_slice %6 {offsets = [8, 0], sizes = [24, 256], strides = [1, 1]} : vector<32x256xf32> to vector<24x256xf32>
    %cst_7 = arith.constant 0.000000e+00 : f32
    %cst_8 = arith.constant 6.000000e+00 : f32
    %9 = vector.broadcast %cst_7 : f32 to vector<24x256xf32>
    %10 = arith.maximumf %9, %8 : vector<24x256xf32>
    %11 = vector.broadcast %cst_8 : f32 to vector<24x256xf32>
    %12 = arith.minimumf %11, %10 : vector<24x256xf32>
    %c0_9 = arith.constant 0 : index
    %c0_10 = arith.constant 0 : index
    %13 = vector.load %arg3[%c0_9, %c0_10] : memref<2x256xi32, #tpu.memory_space<vmem>>, vector<1x256xi32>
    %c1 = arith.constant 1 : index
    %c0_11 = arith.constant 0 : index
    %14 = vector.load %arg3[%c1, %c0_11] : memref<2x256xi32, #tpu.memory_space<vmem>>, vector<1x256xi32>
    %c8_i32 = arith.constant 8 : i32
    %15 = arith.muli %arg1, %c8_i32 : i32
    %c1_i32 = arith.constant 1 : i32
    %16 = arith.subi %15, %c1_i32 : i32
    %17 = vector.broadcast %16 : i32 to vector<1x256xi32>
    %18 = arith.addi %13, %17 : vector<1x256xi32>
    %c0_12 = arith.constant 0 : index
    %c0_13 = arith.constant 0 : index
    %19 = vector.load %arg6[%c0_12, %c0_13] : memref<24x9xf32, #tpu.memory_space<vmem>>, vector<24x9xf32>
    %20 = vector.extract_strided_slice %19 {offsets = [0, 4], sizes = [24, 1], strides = [1, 1]} : vector<24x9xf32> to vector<24x1xf32>
    %21 = vector.broadcast %20 : vector<24x1xf32> to vector<24x256xf32>
    %22 = arith.mulf %12, %21 : vector<24x256xf32>
    %c17_i32 = arith.constant 17 : i32
    %23 = tpu.dynamic_rotate %12 by %c17_i32 dim 1 : vector<24x256xf32>, i32 -> vector<24x256xf32>
    %c1_i32_14 = arith.constant 1 : i32
    %24 = vector.broadcast %c1_i32_14 : i32 to vector<1x256xi32>
    %25 = arith.cmpi sge, %14, %24 : vector<1x256xi32>
    %c1_i32_15 = arith.constant 1 : i32
    %26 = vector.broadcast %c1_i32_15 : i32 to vector<1x256xi32>
    %27 = arith.cmpi sge, %18, %26 : vector<1x256xi32>
    %28 = arith.andi %25, %27 : vector<1x256xi1>
    %cst_16 = arith.constant 0.000000e+00 : f32
    %29 = vector.shape_cast %28 : vector<1x256xi1> to vector<1x256xi1>
    %30 = vector.broadcast %29 : vector<1x256xi1> to vector<24x256xi1>
    %31 = vector.broadcast %cst_16 : f32 to vector<24x256xf32>
    %32 = arith.select %30, %23, %31 : vector<24x256xi1>, vector<24x256xf32>
    %33 = vector.extract_strided_slice %19 {offsets = [0, 0], sizes = [24, 1], strides = [1, 1]} : vector<24x9xf32> to vector<24x1xf32>
    %34 = vector.broadcast %33 : vector<24x1xf32> to vector<24x256xf32>
    %35 = arith.mulf %32, %34 : vector<24x256xf32>
    %36 = arith.addf %22, %35 : vector<24x256xf32>
    %c16_i32 = arith.constant 16 : i32
    %37 = tpu.dynamic_rotate %12 by %c16_i32 dim 1 : vector<24x256xf32>, i32 -> vector<24x256xf32>
    %c1_i32_17 = arith.constant 1 : i32
    %38 = vector.broadcast %c1_i32_17 : i32 to vector<1x256xi32>
    %39 = arith.cmpi sge, %18, %38 : vector<1x256xi32>
    %cst_18 = arith.constant 0.000000e+00 : f32
    %40 = vector.shape_cast %39 : vector<1x256xi1> to vector<1x256xi1>
    %41 = vector.broadcast %40 : vector<1x256xi1> to vector<24x256xi1>
    %42 = vector.broadcast %cst_18 : f32 to vector<24x256xf32>
    %43 = arith.select %41, %37, %42 : vector<24x256xi1>, vector<24x256xf32>
    %44 = vector.extract_strided_slice %19 {offsets = [0, 1], sizes = [24, 1], strides = [1, 1]} : vector<24x9xf32> to vector<24x1xf32>
    %45 = vector.broadcast %44 : vector<24x1xf32> to vector<24x256xf32>
    %46 = arith.mulf %43, %45 : vector<24x256xf32>
    %47 = arith.addf %36, %46 : vector<24x256xf32>
    %c15_i32 = arith.constant 15 : i32
    %48 = tpu.dynamic_rotate %12 by %c15_i32 dim 1 : vector<24x256xf32>, i32 -> vector<24x256xf32>
    %c14_i32 = arith.constant 14 : i32
    %49 = vector.broadcast %c14_i32 : i32 to vector<1x256xi32>
    %50 = arith.cmpi sle, %14, %49 : vector<1x256xi32>
    %c1_i32_19 = arith.constant 1 : i32
    %51 = vector.broadcast %c1_i32_19 : i32 to vector<1x256xi32>
    %52 = arith.cmpi sge, %18, %51 : vector<1x256xi32>
    %53 = arith.andi %50, %52 : vector<1x256xi1>
    %cst_20 = arith.constant 0.000000e+00 : f32
    %54 = vector.shape_cast %53 : vector<1x256xi1> to vector<1x256xi1>
    %55 = vector.broadcast %54 : vector<1x256xi1> to vector<24x256xi1>
    %56 = vector.broadcast %cst_20 : f32 to vector<24x256xf32>
    %57 = arith.select %55, %48, %56 : vector<24x256xi1>, vector<24x256xf32>
    %58 = vector.extract_strided_slice %19 {offsets = [0, 2], sizes = [24, 1], strides = [1, 1]} : vector<24x9xf32> to vector<24x1xf32>
    %59 = vector.broadcast %58 : vector<24x1xf32> to vector<24x256xf32>
    %60 = arith.mulf %57, %59 : vector<24x256xf32>
    %61 = arith.addf %47, %60 : vector<24x256xf32>
    %c1_i32_21 = arith.constant 1 : i32
    %62 = tpu.dynamic_rotate %12 by %c1_i32_21 dim 1 : vector<24x256xf32>, i32 -> vector<24x256xf32>
    %c1_i32_22 = arith.constant 1 : i32
    %63 = vector.broadcast %c1_i32_22 : i32 to vector<1x256xi32>
    %64 = arith.cmpi sge, %14, %63 : vector<1x256xi32>
    %cst_23 = arith.constant 0.000000e+00 : f32
    %65 = vector.shape_cast %64 : vector<1x256xi1> to vector<1x256xi1>
    %66 = vector.broadcast %65 : vector<1x256xi1> to vector<24x256xi1>
    %67 = vector.broadcast %cst_23 : f32 to vector<24x256xf32>
    %68 = arith.select %66, %62, %67 : vector<24x256xi1>, vector<24x256xf32>
    %69 = vector.extract_strided_slice %19 {offsets = [0, 3], sizes = [24, 1], strides = [1, 1]} : vector<24x9xf32> to vector<24x1xf32>
    %70 = vector.broadcast %69 : vector<24x1xf32> to vector<24x256xf32>
    %71 = arith.mulf %68, %70 : vector<24x256xf32>
    %72 = arith.addf %61, %71 : vector<24x256xf32>
    %c255_i32 = arith.constant 255 : i32
    %73 = tpu.dynamic_rotate %12 by %c255_i32 dim 1 : vector<24x256xf32>, i32 -> vector<24x256xf32>
    %c14_i32_24 = arith.constant 14 : i32
    %74 = vector.broadcast %c14_i32_24 : i32 to vector<1x256xi32>
    %75 = arith.cmpi sle, %14, %74 : vector<1x256xi32>
    %cst_25 = arith.constant 0.000000e+00 : f32
    %76 = vector.shape_cast %75 : vector<1x256xi1> to vector<1x256xi1>
    %77 = vector.broadcast %76 : vector<1x256xi1> to vector<24x256xi1>
    %78 = vector.broadcast %cst_25 : f32 to vector<24x256xf32>
    %79 = arith.select %77, %73, %78 : vector<24x256xi1>, vector<24x256xf32>
    %80 = vector.extract_strided_slice %19 {offsets = [0, 5], sizes = [24, 1], strides = [1, 1]} : vector<24x9xf32> to vector<24x1xf32>
    %81 = vector.broadcast %80 : vector<24x1xf32> to vector<24x256xf32>
    %82 = arith.mulf %79, %81 : vector<24x256xf32>
    %83 = arith.addf %72, %82 : vector<24x256xf32>
    %c241_i32 = arith.constant 241 : i32
    %84 = tpu.dynamic_rotate %12 by %c241_i32 dim 1 : vector<24x256xf32>, i32 -> vector<24x256xf32>
    %c1_i32_26 = arith.constant 1 : i32
    %85 = vector.broadcast %c1_i32_26 : i32 to vector<1x256xi32>
    %86 = arith.cmpi sge, %14, %85 : vector<1x256xi32>
    %c14_i32_27 = arith.constant 14 : i32
    %87 = vector.broadcast %c14_i32_27 : i32 to vector<1x256xi32>
    %88 = arith.cmpi sle, %18, %87 : vector<1x256xi32>
    %89 = arith.andi %86, %88 : vector<1x256xi1>
    %cst_28 = arith.constant 0.000000e+00 : f32
    %90 = vector.shape_cast %89 : vector<1x256xi1> to vector<1x256xi1>
    %91 = vector.broadcast %90 : vector<1x256xi1> to vector<24x256xi1>
    %92 = vector.broadcast %cst_28 : f32 to vector<24x256xf32>
    %93 = arith.select %91, %84, %92 : vector<24x256xi1>, vector<24x256xf32>
    %94 = vector.extract_strided_slice %19 {offsets = [0, 6], sizes = [24, 1], strides = [1, 1]} : vector<24x9xf32> to vector<24x1xf32>
    %95 = vector.broadcast %94 : vector<24x1xf32> to vector<24x256xf32>
    %96 = arith.mulf %93, %95 : vector<24x256xf32>
    %97 = arith.addf %83, %96 : vector<24x256xf32>
    %c240_i32 = arith.constant 240 : i32
    %98 = tpu.dynamic_rotate %12 by %c240_i32 dim 1 : vector<24x256xf32>, i32 -> vector<24x256xf32>
    %c14_i32_29 = arith.constant 14 : i32
    %99 = vector.broadcast %c14_i32_29 : i32 to vector<1x256xi32>
    %100 = arith.cmpi sle, %18, %99 : vector<1x256xi32>
    %cst_30 = arith.constant 0.000000e+00 : f32
    %101 = vector.shape_cast %100 : vector<1x256xi1> to vector<1x256xi1>
    %102 = vector.broadcast %101 : vector<1x256xi1> to vector<24x256xi1>
    %103 = vector.broadcast %cst_30 : f32 to vector<24x256xf32>
    %104 = arith.select %102, %98, %103 : vector<24x256xi1>, vector<24x256xf32>
    %105 = vector.extract_strided_slice %19 {offsets = [0, 7], sizes = [24, 1], strides = [1, 1]} : vector<24x9xf32> to vector<24x1xf32>
    %106 = vector.broadcast %105 : vector<24x1xf32> to vector<24x256xf32>
    %107 = arith.mulf %104, %106 : vector<24x256xf32>
    %108 = arith.addf %97, %107 : vector<24x256xf32>
    %c239_i32 = arith.constant 239 : i32
    %109 = tpu.dynamic_rotate %12 by %c239_i32 dim 1 : vector<24x256xf32>, i32 -> vector<24x256xf32>
    %c14_i32_31 = arith.constant 14 : i32
    %110 = vector.broadcast %c14_i32_31 : i32 to vector<1x256xi32>
    %111 = arith.cmpi sle, %14, %110 : vector<1x256xi32>
    %c14_i32_32 = arith.constant 14 : i32
    %112 = vector.broadcast %c14_i32_32 : i32 to vector<1x256xi32>
    %113 = arith.cmpi sle, %18, %112 : vector<1x256xi32>
    %114 = arith.andi %111, %113 : vector<1x256xi1>
    %cst_33 = arith.constant 0.000000e+00 : f32
    %115 = vector.shape_cast %114 : vector<1x256xi1> to vector<1x256xi1>
    %116 = vector.broadcast %115 : vector<1x256xi1> to vector<24x256xi1>
    %117 = vector.broadcast %cst_33 : f32 to vector<24x256xf32>
    %118 = arith.select %116, %109, %117 : vector<24x256xi1>, vector<24x256xf32>
    %119 = vector.extract_strided_slice %19 {offsets = [0, 8], sizes = [24, 1], strides = [1, 1]} : vector<24x9xf32> to vector<24x1xf32>
    %120 = vector.broadcast %119 : vector<24x1xf32> to vector<24x256xf32>
    %121 = arith.mulf %118, %120 : vector<24x256xf32>
    %122 = arith.addf %108, %121 : vector<24x256xf32>
    %c0_34 = arith.constant 0 : index
    %c0_35 = arith.constant 0 : index
    %123 = vector.load %arg7[%c0_34, %c0_35] : memref<24x1xf32, #tpu.memory_space<vmem>>, vector<24x1xf32>
    %124 = vector.broadcast %123 : vector<24x1xf32> to vector<24x256xf32>
    %125 = arith.addf %122, %124 : vector<24x256xf32>
    %cst_36 = arith.constant 0.000000e+00 : f32
    %cst_37 = arith.constant 6.000000e+00 : f32
    %126 = vector.broadcast %cst_36 : f32 to vector<24x256xf32>
    %127 = arith.maximumf %126, %125 : vector<24x256xf32>
    %128 = vector.broadcast %cst_37 : f32 to vector<24x256xf32>
    %129 = arith.minimumf %128, %127 : vector<24x256xf32>
    %c0_38 = arith.constant 0 : index
    %c0_39 = arith.constant 0 : index
    %130 = vector.load %arg8[%c0_38, %c0_39] : memref<8x24xf32, #tpu.memory_space<vmem>>, vector<8x24xf32>
    %cst_40 = arith.constant dense<0.000000e+00> : vector<8x256xf32>
    %131 = tpu.matmul %130, %129, %cst_40 {dimension_numbers = #tpu.dot_dimension_numbers<[1], [0], [0], [1], [0, 0, 1, 1], [], []>} : vector<8x24xf32>, vector<24x256xf32>, vector<8x256xf32> -> vector<8x256xf32>
    %c0_41 = arith.constant 0 : index
    %c0_42 = arith.constant 0 : index
    %132 = vector.load %arg9[%c0_41, %c0_42] : memref<8x1xf32, #tpu.memory_space<vmem>>, vector<8x1xf32>
    %133 = vector.broadcast %132 : vector<8x1xf32> to vector<8x256xf32>
    %134 = arith.addf %131, %133 : vector<8x256xf32>
    %135 = arith.addf %134, %7 : vector<8x256xf32>
    %136 = vector.extract_strided_slice %135 {offsets = [0, 16], sizes = [8, 128], strides = [1, 1]} : vector<8x256xf32> to vector<8x128xf32>
    %c0_43 = arith.constant 0 : index
    %c0_44 = arith.constant 0 : index
    %c0_45 = arith.constant 0 : index
    %137 = vector.load %arg10[%c0_43, %c0_44, %c0_45] : memref<1x8x128xf32, #tpu.memory_space<vmem>>, vector<1x8x128xf32>
    %138 = vector.shape_cast %137 : vector<1x8x128xf32> to vector<8x128xf32>
    %139 = vector.shape_cast %136 : vector<8x128xf32> to vector<1x8x128xf32>
    tpu.vector_store %arg10[%c0_43, %c0_44, %c0_45], %139 {strides = array<i32>} : memref<1x8x128xf32, #tpu.memory_space<vmem>>, vector<1x8x128xf32>,
    return
  }
  func.func @transform_0(%arg0: i32, %arg1: i32) -> (i32, i32, i32, i32) {
    %c0_i32 = arith.constant 0 : i32
    %c0_i32_0 = arith.constant 0 : i32
    %c0_i32_1 = arith.constant 0 : i32
    return %arg0, %arg1, %c0_i32, %c0_i32_0 : i32, i32, i32, i32
  }
  func.func @transform_1(%arg0: i32, %arg1: i32) -> (i32, i32) {
    %c0_i32 = arith.constant 0 : i32
    %c0_i32_0 = arith.constant 0 : i32
    %c0_i32_1 = arith.constant 0 : i32
    return %c0_i32, %c0_i32_0 : i32, i32
  }
  func.func @transform_2(%arg0: i32, %arg1: i32) -> (i32, i32) {
    %c0_i32 = arith.constant 0 : i32
    %c0_i32_0 = arith.constant 0 : i32
    %c0_i32_1 = arith.constant 0 : i32
    return %c0_i32, %c0_i32_0 : i32, i32
  }
  func.func @transform_3(%arg0: i32, %arg1: i32) -> (i32, i32) {
    %c0_i32 = arith.constant 0 : i32
    %c0_i32_0 = arith.constant 0 : i32
    %c0_i32_1 = arith.constant 0 : i32
    return %c0_i32, %c0_i32_0 : i32, i32
  }
  func.func @transform_4(%arg0: i32, %arg1: i32) -> (i32, i32) {
    %c0_i32 = arith.constant 0 : i32
    %c0_i32_0 = arith.constant 0 : i32
    %c0_i32_1 = arith.constant 0 : i32
    return %c0_i32, %c0_i32_0 : i32, i32
  }
  func.func @transform_5(%arg0: i32, %arg1: i32) -> (i32, i32) {
    %c0_i32 = arith.constant 0 : i32
    %c0_i32_0 = arith.constant 0 : i32
    %c0_i32_1 = arith.constant 0 : i32
    return %c0_i32, %c0_i32_0 : i32, i32
  }
  func.func @transform_6(%arg0: i32, %arg1: i32) -> (i32, i32) {
    %c0_i32 = arith.constant 0 : i32
    %c0_i32_0 = arith.constant 0 : i32
    %c0_i32_1 = arith.constant 0 : i32
    return %c0_i32, %c0_i32_0 : i32, i32
  }
  func.func @transform_7(%arg0: i32, %arg1: i32) -> (i32, i32) {
    %c0_i32 = arith.constant 0 : i32
    %c0_i32_0 = arith.constant 0 : i32
    %c0_i32_1 = arith.constant 0 : i32
    return %c0_i32, %c0_i32_0 : i32, i32
  }
  func.func @transform_8(%arg0: i32, %arg1: i32) -> (i32, i32, i32) {
    %c0_i32 = arith.constant 0 : i32
    %c0_i32_0 = arith.constant 0 : i32
    return %arg0, %c0_i32, %arg1 : i32, i32, i32
  }
}

</mosaic_0001>

<bundles_post_ra>
// kernel: tpu_custom_call.1
= control target key start
LH: loop header
LB: loop body
LE: loop exit
PB: predicated region body
PF: predicated region fallthrough
CT: control target
= control target key end

     0   :  { %13 = vsyncpa [#allocation3], 0  ;;  %s2297_s0 = inlined_call_operand.vmem [shape: f32[2,2,8,256], index: 0, kind: input, shape index: {}]   ;;  %s2298_s1 = inlined_call_operand.vmem [shape: s32[2,256], index: 1, kind: input, shape index: {}]   ;;  %s2299_s2 = inlined_call_operand.vmem [shape: f32[32,8], index: 2, kind: input, shape index: {}]   ;;  %s2300_s3 = inlined_call_operand.vmem [shape: f32[32,1], index: 3, kind: input, shape index: {}]   ;;  %s2301_s4 = inlined_call_operand.vmem [shape: f32[24,9], index: 4, kind: input, shape index: {}]   ;;  %s2302_s5 = inlined_call_operand.vmem [shape: f32[24,1], index: 5, kind: input, shape index: {}]   ;;  %s2303_s6 = inlined_call_operand.vmem [shape: f32[8,24], index: 6, kind: input, shape index: {}]   ;;  %s2304_s7 = inlined_call_operand.vmem [shape: f32[8,1], index: 7, kind: input, shape index: {}]   ;;  %s2305_s8 = inlined_call_operand.hbm [shape: f32[2,8,256], index: 8, kind: output, shape index: {}]  }
   0x1   :  { %15 = vsyncpa [#allocation3 + $0x1], 0  ;;  %s1515_s27 = smov 0   ;;  %s1517_s28 = smov 0  }
   0x2   :  { %s1519_s29 = smov 0   ;;  %s1521_s30 = smov 0  }
   0x3   :  { %s1523_s9 = smov 0   ;;  %s1525_s10 = smov 0  }
   0x4   :  { %s1527_s11 = smov 0   ;;  %s1529_s12 = smov 0  }
   0x5 LB: > { %2332 = sst [smem:[#allocation5_spill]] %s1441_s10  ;;  %s1224_s13 = sadd.s32 4294967295, %s1449_s12   ;;  %s1449_s12 = sphi %s1529_s12, %s21_s12   ;;  %s1445_s11 = sphi %s1527_s11, %s2431_s11   ;;  %s1441_s10 = sphi %s1525_s10, %s2430_s10   ;;  %s1437_s9 = sphi %s1523_s9, %s2429_s9   ;;  %s1433_s30 = sphi %s1521_s30, %s2428_s30   ;;  %s1429_s29 = sphi %s1519_s29, %s2434_s29   ;;  %s1425_s28 = sphi %s1517_s28, %s2433_s28   ;;  %s1421_s27 = sphi %s1515_s27, %s2432_s27  }
   0x6   : > { %2333 = sst [smem:[#allocation6_spill]] %s1445_s11  ;;  %s1225_s14 = sadd.s32 4294967294, %s1449_s12  }
   0x7   : > { %s30_s15 = sadd.s32 1, %s1441_s10  ;;  %s33_s16 = sadd.s32 1, %s1445_s11 }
   0x8   : > { %p31_p0 = scmp.ge.s32.totalorder %s30_s15, 2  ;;  %p227_p1 = scmp.ne.s32.totalorder %s1429_s29, %s1425_s28 }
   0x9   : > { %p228_p2 = scmp.eq.s32.totalorder %s1224_s13, 3  ;;  %p233_p5 = scmp.ne.s32.totalorder %s1425_s28, %s1421_s27 }
   0xa   : > { %s2436_s15 = smov (%p31_p0, %s30_s15), 0  ;;  %s2438_s16 = smov (!%p31_p0, %s33_s16), %s1445_s11 }
   0xb   : > { %2334 = sst [smem:[#allocation7_spill]] %s2436_s15  ;;  %s213_s17 = ssub.s32 %s1441_s10, %s2436_s15 }
   0xc   : > { %p1566_p3 = por %p228_p2, %p227_p1  ;;  %p35_p4 = scmp.ge.s32.totalorder %s2438_s16, 2 }
   0xd   : > { %p234_p6 = scmp.eq.s32.totalorder %s1225_s14, 3  ;;  %p1228_p7 = scmp.ge.s32.totalorder %s1449_s12, 1 }
   0xe   : > { %s2440_s16 = smov (%p35_p4, %s2438_s16), 0  ;;  %p285_p9 = scmp.lt.s32.totalorder %s1449_s12, 5 }
   0xf   : > { %2336 = sst [smem:[#allocation8_spill]] %s2440_s16  ;;  %p1575_p8 = por %p234_p6, %p233_p5 }
  0x10   : > { %s212_s20 = ssub.s32 %s1445_s11, %s2440_s16  ;;  %s217_s21 = sadd.s32 1, %s1429_s29 }
  0x11   : > { %s214_s22 = sor.u32 %s213_s17, %s212_s20  ;;  %p286_p10 = pnand %p1228_p7, %p285_p9 }
  0x12   : > { %p215_p11 = scmp.eq.s32.totalorder %s214_s22, 0 }
  0x13   : > { %289 = sbr.rel (%p286_p10) target bundleno = 799 (0x31f), region = 52 }
  0x14   : > { %s1584_s23 = scalar_select %p215_p11, %s1429_s29, %s217_s21  }
  0x18   : > { %p323_p12 = scmp.lt.s32.totalorder %s1437_s9, 1  ;;  %p325_p13 = scmp.lt.s32.totalorder %s1433_s30, 1  ;;  %v1451_v0 = vmov 0.0   ;;  %v1591_v1 = vld [vmem:[%s2301_s4] sm:$0xff]  ;;  %v1452_v2 = vmov 4   ;;  %v2310_v3 = vmov 0  }
  0x19   : > { %439 = vmatprep.mubr.f32.mxu0 %v1451_v0  ;;  %457 = vmatprep.mubr.f32.mxu1 %v1451_v0  ;;  %v339_v4 = vld [vmem:[%s2300_s3 + $0x8] sm:$0xff]  ;;  %v1454_v5 = vmov 1   ;;  %v334_v6 = vld [vmem:[%s2299_s2] sm:$0xff]  ;;  %vm362_vm0 = vcmask 64512   ;;  %v337_v9 = vld [vmem:[%s2299_s2 + $0x18] sm:$0xff]  ;;  %v1455_v12 = vmov 2  }
  0x1a   : > { %s324_s26 = scalar_select %p323_p12, %s1437_s9, 1  ;;  %1340 = vset.pattern.permute.xlu0 %v1452_v2  ;;  %1337 = vset.pattern.permute.xlu1 %v2310_v3  ;;  %v485_v10 = vld [vmem:[%s2301_s4 + $0x10] sm:$0xff]  ;;  %v335_v11 = vld [vmem:[%s2299_s2 + $0x8] sm:$0xff]  ;;  %v1456_v15 = vmov 3   ;;  %v1457_v16 = vmov 5   ;;  %v1458_v17 = vmov 6  }
  0x1b   : > { %s326_s13 = scalar_select %p325_p13, %s1433_s30, 1  ;;  %488 = vperm.xlu0 %1340, %v1591_v1   ;;  %349 = vperm.xlu1 %1337, %v339_v4   ;;  %v336_v13 = vld [vmem:[%s2299_s2 + $0x10] sm:$0xff]  ;;  %v484_v14 = vld [vmem:[%s2301_s4 + $0x8] sm:$0xff]  ;;  %v1459_v18 = vmov 7   ;;  %v341_v19 = vld [vmem:[%s2300_s3 + $0x18] sm:$0xff]  ;;  %v1460_v23 = vmov 8  }
  0x1c   : > { %s1231_s14 = sshll.u32 %s324_s26, 2  ;;  %v340_v20 = vld [vmem:[%s2300_s3 + $0x10] sm:$0xff]  ;;  %v998_v22 = vld [vmem:[%s2302_s5 + $0x8] sm:$0xff]  ;;  %s1461_s11 = smov 111  }
  0x1d   : > { %s1230_s21 = sshll.u32 %s326_s13, 1  ;;  %v999_v21 = vld [vmem:[%s2302_s5 + $0x10] sm:$0xff]  ;;  %s1463_s17 = smov 16  }
  0x1e   : > { %s329_s22 = sadd.s32 %s1231_s14, %s1230_s21  ;;  %s1464_s20 = smov 15  }
  0x1f   : > { %s1232_s24 = sshll.u32 %s329_s22, 3  ;;  %1343 = vset.pattern.permute.xlu0 %v1454_v5  ;;  %1338 = vset.pattern.permute.xlu1 %v1452_v2  ;;  %s1465_s21 = smov 1  }
  0x20   : > { %s331_s15 = scalar_lea.vmem %s2297_s0, %s1232_s24  ;;  %609 = vperm.xlu0 %1343, %v1591_v1   ;;  %498 = vperm.xlu1 %1338, %v485_v10   ;;  %s1466_s22 = smov 127  }
  0x21   : > { %v333_v7 = vld [vmem:[%s331_s15 + $0x8] sm:$0xff]  ;;  %v332_v8 = vld [vmem:[%s331_s15] sm:$0xff]  ;;  %s1462_s15 = smov 17   ;;  %s1467_s24 = smov 113  }
  0x22   : > { %405 = vmatprep.subr.mxu0 %v333_v7  ;;  %1246 = vmatprep.subr.mxu1 %v333_v7  ;;  %s1468_s25 = smov 112   ;;  %s1238_s16 = sshll.u32 %s1433_s30, 3 }
  0x23   : > { %406 = vmatpush1.msra.mxu0 %v332_v8  ;;  %1247 = vmatpush1.msra.mxu1 %v332_v8  ;;  %s1239_s14 = sadd.s32 4294967295, %s1238_s16  ;;  %s320_s16 = sand.u32 1, %s1425_s28  }
  0x24   : > { %1233 = vmatmul.mubr.msk.f32.vlgmr.msra.gmra.mxu0 %vm362_vm0, %v334_v6  ;;  %1236 = vmatmul.mubr.msk.f32.vlgmr.msra.gmra.mxu1 %vm362_vm0, %v337_v9  ;;  %s1242_s10 = sshll.u32 %s1437_s9, 1 }
  0x25   : > { %445 = vmatprep.mubr.f32.mxu0 %v1451_v0  ;;  %1344 = vset.pattern.permute.xlu0 %v1455_v12 }
  0x26   : > { %679 = vperm.xlu0 %1344, %v485_v10   ;;  %1108 = vmatprep.mubr.f32.mxu1 %v1451_v0 }
  0x27   : > { %493 = vperm.xlu1 %1338, %v484_v14  }
  0x28   : > { %1234 = vmatmul.mubr.msk.f32.gmra.mxu0 %vm362_vm0, %v335_v11 }
  0x29   : > { %451 = vmatprep.mubr.f32.mxu0 %v1451_v0 }
  0x2a   : > { %671 = vperm.xlu0 %1344, %v1591_v1  }
  0x2b   : > { %1339 = vset.pattern.permute.xlu1 %v1454_v5 }
  0x2c   : > { %1235 = vmatmul.mubr.msk.f32.gmra.mxu0 %vm362_vm0, %v336_v13  ;;  %617 = vperm.xlu1 %1339, %v485_v10  }
  0x2e   : > { %1348 = vset.pattern.permute.xlu0 %v1456_v15 }
  0x2f   : > { %731 = vperm.xlu0 %1348, %v1591_v1  }
  0x30   : > { %1341 = vset.pattern.permute.xlu1 %v2310_v3 }
  0x31   : > { %549 = vperm.xlu1 %1341, %v1591_v1  }
  0x33   : > { %1350 = vset.pattern.permute.xlu0 %v1457_v16 }
  0x34   : > { %791 = vperm.xlu0 %1350, %v1591_v1  }
  0x35   : > { %1342 = vset.pattern.permute.xlu1 %v1454_v5 }
  0x36   : > { %613 = vperm.xlu1 %1342, %v484_v14  }
  0x38   : > { %1352 = vset.pattern.permute.xlu0 %v1458_v17 }
  0x39   : > { %853 = vperm.xlu0 %1352, %v1591_v1  }
  0x3a   : > { %1345 = vset.pattern.permute.xlu1 %v1455_v12 }
  0x3b   : > { %675 = vperm.xlu1 %1345, %v484_v14  }
  0x3d   : > { %1354 = vset.pattern.permute.xlu0 %v1459_v18 }
  0x3e   : > { %913 = vperm.xlu0 %1354, %v1591_v1  }
  0x3f   : > { %1346 = vset.pattern.permute.xlu1 %v1456_v15 }
  0x40   : > { %739 = vperm.xlu1 %1346, %v485_v10  }
  0x42   : > { %1355 = vset.pattern.permute.xlu0 %v2310_v3 }
  0x43   : > { %359 = vperm.xlu0 %1355, %v341_v19  }
  0x44   : > { %735 = vperm.xlu1 %1346, %v484_v14  }
  0x47   : > { %354 = vperm.xlu0 %1355, %v340_v20  }
  0x48   : > { %1347 = vset.pattern.permute.xlu1 %v1457_v16  ;;  %v997_v16 = vld [vmem:[%s2302_s5] sm:$0xff] }
  0x49   : > { %799 = vperm.xlu1 %1347, %v485_v10  }
  0x4b   : > { %557 = vperm.xlu0 %1355, %v485_v10  }
  0x4d   : > { %795 = vperm.xlu1 %1347, %v484_v14  }
  0x4f   : > { %553 = vperm.xlu0 %1355, %v484_v14  }
  0x51   : > { %1349 = vset.pattern.permute.xlu1 %v1458_v17  ;;  %v476_v17 = vld [vmem:[%s2298_s1] ss:$2 sm:$0x3] }
  0x52   : > { %861 = vperm.xlu1 %1349, %v485_v10  }
  0x53   : > { %1012 = vperm.xlu0 %1355, %v999_v21  }
  0x56   : > { %857 = vperm.xlu1 %1349, %v484_v14  }
  0x57   : > { %1007 = vperm.xlu0 %1355, %v998_v22   ;;  %v1034_v22 = vld [vmem:[%s2304_s7] sm:$0xff] }
  0x5a   : > { %1351 = vset.pattern.permute.xlu1 %v1459_v18  ;;  %v481_v18 = vstv %s1239_s14  ;;  %s1229_s14 = sshll.u32 %s320_s16, 3 }
  0x5b   : > { %921 = vperm.xlu1 %1351, %v485_v10   ;;  %v1824_v21 = vadd.s32 %v481_v18, %v476_v17 }
  0x5d   : > { %vm529_vm2 = vcmp.ge.s32.totalorder %v1824_v21, 1  ;;  %vm833_vm7 = vcmp.le.s32.totalorder %v1824_v21, 14 }
  0x5f   : > { %917 = vperm.xlu1 %1351, %v484_v14  }
  0x63   : > { %1353 = vset.pattern.permute.xlu1 %v1460_v23  ;;  %v1832_v23 = vld [vmem:[%s2298_s1 + $0x1] ss:$2 sm:$0x3] }
  0x64   : > { %982 = vperm.xlu1 %1353, %v485_v10   ;;  %v338_v10 = vld [vmem:[%s2300_s3] sm:$0xff]  ;;  %vm528_vm1 = vcmp.ge.s32.totalorder %v1832_v23, 1  ;;  %vm651_vm3 = vcmp.le.s32.totalorder %v1832_v23, 14 }
  0x65   : > { %vm530_vm4 = vmand %vm528_vm1, %vm529_vm2 }
  0x66   : > { %vm652_vm5 = vmand %vm651_vm3, %vm529_vm2 }
  0x67   : > { %vm834_vm0 = vmand %vm528_vm1, %vm833_vm7 }
  0x68   : > { %978 = vperm.xlu1 %1353, %v484_v14  }
  0x6c   : > { %974 = vperm.xlu1 %1353, %v1591_v1  }
  0x70   : > { %1356 = vset.pattern.permute.xlu1 %v2310_v3 }
  0x96   : > { %v1648_v24 = vpop.permute.xlu0 %488  ;;  %v350_v42 = vpop.permute.xlu1 %349 }
  0x9b   : > { %v1650_v25 = vpop.permute.xlu0 %609  ;;  %v1692_v44 = vpop.permute.xlu1 %498 }
  0xa1   : > { %v1652_v26 = vpop.permute.xlu0 %679 }
  0xa2   : > { %v1698_v47 = vpop.permute.xlu1 %493 }
  0xa5   : > { %v1654_v27 = vpop.permute.xlu0 %671 }
  0xa7   : > { %v1704_v49 = vpop.permute.xlu1 %617 }
  0xaa   : > { %v1656_v28 = vpop.permute.xlu0 %731 }
  0xac   : > { %v1716_v52 = vpop.permute.xlu1 %549 }
  0xaf   : > { %v1658_v29 = vpop.permute.xlu0 %791 }
  0xb1   : > { %v1722_v55 = vpop.permute.xlu1 %613 }
  0xb4   : > { %v1660_v30 = vpop.permute.xlu0 %853 }
  0xb6   : > { %v1734_v58 = vpop.permute.xlu1 %675 }
  0xb9   : > { %v1662_v31 = vpop.permute.xlu0 %913 }
  0xbb   : > { %v1740_v62 = vpop.permute.xlu1 %739 }
  0xbe   : > { %v360_v32 = vpop.permute.xlu0 %359 }
  0xbf   : > { %v1752_v0 = vpop.permute.xlu1 %735 }
  0xc2   : > { %v355_v59 = vpop.permute.xlu0 %354 }
  0xc4   : > { %v1758_v1 = vpop.permute.xlu1 %799 }
  0xc6   : > { %v1799_v12 = vpop.permute.xlu0 %557 }
  0xc8   : > { %v1768_v5 = vpop.permute.xlu1 %795 }
  0xca   : > { %v1808_v14 = vpop.permute.xlu0 %553 }
  0xcd   : > { %v1776_v8 = vpop.permute.xlu1 %861 }
  0xce   : > { %v1820_v19 = vpop.permute.xlu0 %1012 }
  0xd1   : > { %v1786_v9 = vpop.permute.xlu1 %857 }
  0xd2   : > { %2340 = vst [vmem:[#allocation11_spill] sm:$0xff] %v1786_v9 }
  0xd6   : > { %v1795_v11 = vpop.permute.xlu1 %921 }
  0xda   : > { %v1803_v13 = vpop.permute.xlu1 %917 }
  0xdb   : > { %2341 = vst [vmem:[#allocation12_spill] sm:$0xff] %v1803_v13  ;;  %v2359_v13 = vmov 0 }
  0xdf   : > { %v1810_v15 = vpop.permute.xlu1 %982 }
  0xe3   : > { %v1822_v20 = vpop.permute.xlu1 %978 }
  0xe4   : > { %v459_v33 = vpop.f32.mrf.mxu1  ;;  %v1680_v41 = vpop.f32.mrf.mxu0  ;;  %2342 = vst [vmem:[#allocation13_spill] sm:$0xff] %v1822_v20 }
  0xe5   : > { %v460_v34 = vadd.f32 %v459_v33, %v360_v32  ;;  %2338 = vst [vmem:[#allocation9_spill] sm:$0xff] %v1680_v41 }
  0xe6   : > { %v461_v35 = vpop.f32.mrf.mxu1  ;;  %v1686_v43 = vpop.f32.mrf.mxu0 }
  0xe7   : > { %v468_v36 = vmax.f32 %v460_v34, 0.0  ;;  %v462_v37 = vadd.f32 %v461_v35, %v360_v32  ;;  %2339 = vst [vmem:[#allocation10_spill] sm:$0xff] %v1686_v43  ;;  %v519_v32 = vlaneseq  ;;  %v1836_v34 = vpop.permute.xlu0 %1007  ;;  %v1838_v35 = vpop.permute.xlu1 %974 }
  0xe8   : > { %v447_v45 = vpop.f32.mrf.mxu0  ;;  %2343 = vst [vmem:[#allocation14_spill] sm:$0xff] %v1836_v34 }
  0xe9   : > { %v1664_v38 = vmin.f32 %v468_v36, 6.0  ;;  %v469_v39 = vmax.f32 %v462_v37, 0.0  ;;  %v448_v46 = vadd.f32 %v447_v45, %v350_v42  ;;  %v533_v33 = vshrl.u32 %v519_v32, 7 }
  0xea   : > { %v449_v51 = vpop.f32.mrf.mxu0  ;;  %v531_v45 = vsel %vm530_vm4, 1, %v2310_v3 }
  0xeb   : > { %940 = vrot.lane.b32.xlu1 %v1664_v38, %s1461_s11  ;;  %511 = vrot.lane.b32.xlu0 %v1664_v38, %s1462_s15  ;;  %v1670_v40 = vmin.f32 %v469_v39, 6.0  ;;  %v464_v48 = vmax.f32 %v448_v46, 0.0  ;;  %v450_v53 = vadd.f32 %v449_v51, %v350_v42  ;;  %v1843_v36 = vsub.s32 0, %v533_v33 }
  0xec   : > { %v453_v57 = vpop.f32.mrf.mxu0  ;;  %v1845_v37 = vsub.s32 1, %v533_v33  ;;  %v1852_v46 = vand.u32 127, %v519_v32  ;;  %v653_v51 = vsel %vm652_vm5, 1, %v2310_v3 }
  0xed   : > { %v1710_v50 = vmin.f32 %v464_v48, 6.0  ;;  %v465_v54 = vmax.f32 %v450_v53, 0.0  ;;  %v454_v60 = vadd.f32 %v453_v57, %v355_v59  ;;  %v591_v48 = vsel %vm529_vm2, 1, %v2310_v3 }
  0xee   : > { %v455_v2 = vpop.f32.mrf.mxu0  ;;  %v535_v53 = vrot.slane %v531_v45, %v1843_v36  ;;  %vm2318_vm6 = vcmp.lt.s32.totalorder %v1852_v46, 17  ;;  %vm2317_vm10 = vcmp.lt.s32.totalorder %v1852_v46, 16  ;;  %vm2316_vm13 = vcmp.lt.s32.totalorder %v1852_v46, 15 }
  0xef   : > { %517 = vrot.lane.b32.xlu1 %v1670_v40, %s1462_s15  ;;  %576 = vrot.lane.b32.xlu0 %v1664_v38, %s1463_s17  ;;  %v1728_v56 = vmin.f32 %v465_v54, 6.0  ;;  %v466_v61 = vmax.f32 %v454_v60, 0.0  ;;  %v456_v4 = vadd.f32 %v455_v2, %v355_v59  ;;  %v539_v54 = vrot.slane %v531_v45, %v1845_v37 }
  0xf0   : > { %v595_v60 = vrot.slane %v591_v48, %v1843_v36  ;;  %v657_v2 = vrot.slane %v653_v51, %v1843_v36  ;;  %vm1864_vm8 = vcmp.eq.s32.totalorder %v535_v53, 1  ;;  %v773_v45 = vsel %vm651_vm3, 1, %v2310_v3 }
  0xf1   : > { %v1746_v63 = vmin.f32 %v466_v61, 6.0  ;;  %v467_v6 = vmax.f32 %v456_v4, 0.0  ;;  %v599_v61 = vrot.slane %v591_v48, %v1845_v37  ;;  %v661_v4 = vrot.slane %v653_v51, %v1845_v37 }
  0xf2   : > { %vm1868_vm9 = vcmp.eq.s32.totalorder %v539_v54, 1  ;;  %vm1880_vm11 = vcmp.eq.s32.totalorder %v595_v60, 1  ;;  %vm1892_vm14 = vcmp.eq.s32.totalorder %v657_v2, 1  ;;  %v506_v43 = vmul.f32 %v1692_v44, %v1670_v40 }
  0xf3   : > { %582 = vrot.lane.b32.xlu1 %v1670_v40, %s1463_s17  ;;  %636 = vrot.lane.b32.xlu0 %v1664_v38, %s1464_s20  ;;  %v1774_v7 = vmin.f32 %v467_v6, 6.0  ;;  %vm1887_vm12 = vcmp.eq.s32.totalorder %v599_v61, 1  ;;  %vm1896_vm15 = vcmp.eq.s32.totalorder %v661_v4, 1  ;;  %v505_v61 = vmul.f32 %v1692_v44, %v1664_v38 }
  0xf4   : > { %vm2320_vm5 = vcmp.lt.s32.totalorder %v1852_v46, 127 }
  0xf7   : > { %642 = vrot.lane.b32.xlu1 %v1670_v40, %s1464_s20  ;;  %698 = vrot.lane.b32.xlu0 %v1664_v38, %s1465_s21 }
  0xfb   : > { %704 = vrot.lane.b32.xlu1 %v1670_v40, %s1465_s21  ;;  %758 = vrot.lane.b32.xlu0 %v1664_v38, %s1466_s22 }
  0xff   : > { %764 = vrot.lane.b32.xlu1 %v1670_v40, %s1466_s22  ;;  %818 = vrot.lane.b32.xlu0 %v1664_v38, %s1467_s24 }
 0x103   : > { %824 = vrot.lane.b32.xlu1 %v1670_v40, %s1467_s24  ;;  %880 = vrot.lane.b32.xlu0 %v1664_v38, %s1468_s25 }
 0x107   : > { %886 = vrot.lane.b32.xlu1 %v1670_v40, %s1468_s25  ;;  %946 = vrot.lane.b32.xlu0 %v1670_v40, %s1461_s11 }
 0x10b   : > { %814 = vrot.lane.b32.xlu1 %v1710_v50, %s1467_s24  ;;  %507 = vrot.lane.b32.xlu0 %v1710_v50, %s1462_s15 }
 0x10f   : > { %876 = vrot.lane.b32.xlu1 %v1710_v50, %s1468_s25  ;;  %572 = vrot.lane.b32.xlu0 %v1710_v50, %s1463_s17 }
 0x113   : > { %936 = vrot.lane.b32.xlu1 %v1710_v50, %s1461_s11  ;;  %632 = vrot.lane.b32.xlu0 %v1710_v50, %s1464_s20 }
 0x117   : > { %513 = vrot.lane.b32.xlu1 %v1728_v56, %s1462_s15  ;;  %694 = vrot.lane.b32.xlu0 %v1710_v50, %s1465_s21 }
 0x11b   : > { %578 = vrot.lane.b32.xlu1 %v1728_v56, %s1463_s17  ;;  %754 = vrot.lane.b32.xlu0 %v1710_v50, %s1466_s22 }
 0x11f   : > { %638 = vrot.lane.b32.xlu1 %v1728_v56, %s1464_s20  ;;  %820 = vrot.lane.b32.xlu0 %v1728_v56, %s1467_s24 }
 0x123   : > { %700 = vrot.lane.b32.xlu1 %v1728_v56, %s1465_s21  ;;  %574 = vrot.lane.b32.xlu0 %v1746_v63, %s1463_s17 }
 0x127   : > { %760 = vrot.lane.b32.xlu1 %v1728_v56, %s1466_s22  ;;  %634 = vrot.lane.b32.xlu0 %v1746_v63, %s1464_s20 }
 0x12b   : > { %882 = vrot.lane.b32.xlu1 %v1728_v56, %s1468_s25  ;;  %696 = vrot.lane.b32.xlu0 %v1746_v63, %s1465_s21 }
 0x12f   : > { %509 = vrot.lane.b32.xlu1 %v1746_v63, %s1462_s15  ;;  %756 = vrot.lane.b32.xlu0 %v1746_v63, %s1466_s22 }
 0x133   : > { %878 = vrot.lane.b32.xlu1 %v1746_v63, %s1468_s25  ;;  %816 = vrot.lane.b32.xlu0 %v1746_v63, %s1467_s24 }
 0x137   : > { %515 = vrot.lane.b32.xlu1 %v1774_v7, %s1462_s15  ;;  %938 = vrot.lane.b32.xlu0 %v1746_v63, %s1461_s11  ;;  %s1139_s15 = sadd.s32 %s1433_s30, %s1242_s10  ;;  %s1469_s30 = smov [#allocation2]  }
 0x138   : > { %s1361_s9 = sshll.u32 %s1469_s30, 4  ;;  %s1362_s9 = int_to_ptr.vmem [resolvable:$false] %s1361_s9 }
 0x139   : > { %s1363_s13 = scalar_lea.vmem %s1362_s9, 256 }
 0x13b   : > { %580 = vrot.lane.b32.xlu1 %v1774_v7, %s1463_s17  ;;  %884 = vrot.lane.b32.xlu0 %v1774_v7, %s1468_s25  ;;  %s1243_s17 = sshll.u32 %s1139_s15, 7 }
 0x13f   : > { %640 = vrot.lane.b32.xlu1 %v1774_v7, %s1464_s20  ;;  %942 = vrot.lane.b32.xlu0 %v1728_v56, %s1461_s11  ;;  %s322_s20 = scalar_lea.vmem [#allocation2], %s1229_s14 }
 0x143   : > { %702 = vrot.lane.b32.xlu1 %v1774_v7, %s1465_s21  ;;  %344 = vperm.xlu0 %1355, %v338_v10   ;;  %s1143_s21 = sshll.u32 %s322_s20, 4  ;;  %s1144_s21 = int_to_ptr.vmem [resolvable:$true] %s1143_s21 }
 0x144   : > { %s1357_s26 = scalar_lea.vmem %s1144_s21, 128  ;;  %p1364_p4 = scmp.lt.s32.totalorder %s1144_s21, %s1362_s9 }
 0x145   : > { %p1358_p0 = scmp.ne.s32.totalorder %s1144_s21, %s1357_s26  ;;  %p1365_p5 = scmp.lt.s32.totalorder %s1363_s13, %s1357_s26 }
 0x147   : > { %762 = vrot.lane.b32.xlu1 %v1774_v7, %s1466_s22  ;;  %p1359_p1 = pnand %p1358_p0, %p1566_p3  ;;  %p1366_p6 = por %p1365_p5, %p1364_p4 }
 0x149   : > { %p1360_p2 = pneg %p1359_p1 }
 0x14b   : > { %822 = vrot.lane.b32.xlu1 %v1774_v7, %s1467_s24  ;;  %s2251_s24 = scalar_lea.hbm %s2305_s8, %s1243_s17  ;;  %p1367_p7 = pnand %p1366_p6, %p1360_p2 }
 0x14f   : > { %944 = vrot.lane.b32.xlu1 %v1774_v7, %s1461_s11 }
 0x153   : > { %1002 = vperm.xlu1 %1356, %v997_v16   ;;  %v713_v16 = vsel %vm528_vm1, 1, %v2310_v3  ;;  %v777_v3 = vrot.slane %v773_v45, %v1843_v36  ;;  %vm2319_vm1 = vcmp.lt.s32.totalorder %v1852_v46, 1 }
 0x154   : > { %v721_v60 = vrot.slane %v713_v16, %v1845_v37 }
 0x156   : > { %vm1936_vm4 = vcmp.eq.s32.totalorder %v721_v60, 1 }
 0x157   : > { %1037 = vperm.xlu1 %1356, %v1034_v22   ;;  %v2360_v13 = vsel %vm1936_vm4, 4294967295, %v2359_v13  ;;  %v504_v22 = vmul.f32 %v1698_v47, %v1774_v7 }
 0x15d   : > { %v1849_v39 = vpop.permute.xlu1 %940  ;;  %v512_v42 = vpop.permute.xlu0 %511 }
 0x161   : > { %v518_v57 = vpop.permute.xlu1 %517  ;;  %v577_v59 = vpop.permute.xlu0 %576 }
 0x162   : > { %v524_v17 = vsel %vm2318_vm6, %v512_v42, %v518_v57  ;;  %v527_v18 = vsel %vm2318_vm6, %v518_v57, %v512_v42  ;;  %v717_v57 = vrot.slane %v713_v16, %v1843_v36  ;;  %v781_v16 = vrot.slane %v773_v45, %v1845_v37  ;;  %vm955_vm6 = vmand %vm651_vm3, %vm833_vm7 }
 0x163   : > { %v546_v2 = vsel %vm1864_vm8, %v527_v18, 0.0  ;;  %v547_v4 = vsel %vm1868_vm9, %v524_v17, 0.0  ;;  %v2357_v45 = vmov 0 }
 0x164   : > { %v564_v44 = vmul.f32 %v1799_v12, %v546_v2  ;;  %v565_v20 = vmul.f32 %v1799_v12, %v547_v4  ;;  %vm1932_vm2 = vcmp.eq.s32.totalorder %v717_v57, 1 }
 0x165   : > { %v583_v32 = vpop.permute.xlu1 %582  ;;  %v637_v33 = vpop.permute.xlu0 %636  ;;  %v2358_v45 = vsel %vm1932_vm2, 4294967295, %v2357_v45 }
 0x166   : > { %v587_v53 = vsel %vm2317_vm10, %v577_v59, %v583_v32  ;;  %v590_v54 = vsel %vm2317_vm10, %v583_v32, %v577_v59  ;;  %v2356_v32 = vmov 0   ;;  %vm2321_vm10 = vcmp.lt.s32.totalorder %v1852_v46, 113 }
 0x167   : > { %v835_v34 = vsel %vm834_vm0, 1, %v2356_v32  ;;  %v606_v38 = vsel %vm1880_vm11, %v590_v54, 0.0  ;;  %v607_v18 = vsel %vm1887_vm12, %v587_v53, 0.0  ;;  %vm1941_vm0 = vcmp.eq.s32.totalorder %v777_v3, 1 }
 0x168   : > { %v2361_v53 = vmov 0  ;;  %v624_v12 = vmul.f32 %v1704_v49, %v606_v38  ;;  %v625_v54 = vmul.f32 %v1704_v49, %v607_v18  ;;  %v570_v49 = vadd.f32 %v564_v44, %v505_v61 }
 0x169   : > { %v643_v41 = vpop.permute.xlu1 %642  ;;  %v699_v59 = vpop.permute.xlu0 %698  ;;  %v2362_v53 = vsel %vm1941_vm0, 4294967295, %v2361_v53  ;;  %v571_v38 = vadd.f32 %v565_v20, %v506_v43  ;;  %v895_v23 = vsel %vm833_vm7, 1, %v2356_v32 }
 0x16a   : > { %v647_v17 = vsel %vm2316_vm13, %v637_v33, %v643_v41  ;;  %v650_v40 = vsel %vm2316_vm13, %v643_v41, %v637_v33  ;;  %v839_v41 = vrot.slane %v835_v34, %v1843_v36  ;;  %v843_v33 = vrot.slane %v835_v34, %v1845_v37 }
 0x16b   : > { %v668_v57 = vsel %vm1892_vm14, %v650_v40, 0.0  ;;  %v669_v60 = vsel %vm1896_vm15, %v647_v17, 0.0  ;;  %vm1957_vm13 = vcmp.eq.s32.totalorder %v781_v16, 1  ;;  %v2363_v34 = vmov 0 }
 0x16c   : > { %v2364_v34 = vsel %vm1957_vm13, 4294967295, %v2363_v34  ;;  %v687_v16 = vmul.f32 %v1652_v26, %v669_v60  ;;  %v2365_v40 = vmov 0  ;;  %v630_v61 = vadd.f32 %v624_v12, %v570_v49 }
 0x16d   : > { %v705_v2 = vpop.permute.xlu1 %704  ;;  %v759_v4 = vpop.permute.xlu0 %758  ;;  %v631_v43 = vadd.f32 %v625_v54, %v571_v38  ;;  %vm1979_vm3 = vcmp.eq.s32.totalorder %v843_v33, 1  ;;  %v899_v54 = vrot.slane %v895_v23, %v1843_v36 }
 0x16e   : > { %v709_v3 = vsel %vm2319_vm1, %v699_v59, %v705_v2  ;;  %v712_v9 = vsel %vm2319_vm1, %v705_v2, %v699_v59  ;;  %v686_v59 = vmul.f32 %v1652_v26, %v668_v57  ;;  %vm1972_vm1 = vcmp.eq.s32.totalorder %v839_v41, 1 }
 0x16f   : > { %v728_v18 = vsel %vm1932_vm2, %v712_v9, 0.0  ;;  %v729_v17 = vsel %vm1936_vm4, %v709_v3, 0.0  ;;  %v2366_v40 = vsel %vm1972_vm1, 4294967295, %v2365_v40  ;;  %v2367_v9 = vmov 0 }
 0x170   : > { %v2368_v9 = vsel %vm1979_vm3, 4294967295, %v2367_v9  ;;  %v956_v57 = vsel %vm955_vm6, 1, %v2356_v32  ;;  %v746_v26 = vmul.f32 %v1740_v62, %v728_v18  ;;  %v747_v41 = vmul.f32 %v1740_v62, %v729_v17 }
 0x171   : > { %v765_v20 = vpop.permute.xlu1 %764  ;;  %v819_v44 = vpop.permute.xlu0 %818  ;;  %v903_v32 = vrot.slane %v895_v23, %v1845_v37  ;;  %v692_v2 = vadd.f32 %v686_v59, %v630_v61  ;;  %v693_v3 = vadd.f32 %v687_v16, %v631_v43  ;;  %v964_v17 = vrot.slane %v956_v57, %v1845_v37 }
 0x172   : > { %v769_v60 = vsel %vm2320_vm5, %v759_v4, %v765_v20  ;;  %v772_v21 = vsel %vm2320_vm5, %v765_v20, %v759_v4  ;;  %v960_v4 = vrot.slane %v956_v57, %v1843_v36  ;;  %vm2010_vm5 = vcmp.eq.s32.totalorder %v899_v54, 1 }
 0x173   : > { %v788_v12 = vsel %vm1941_vm0, %v769_v60, 0.0  ;;  %v789_v33 = vsel %vm1957_vm13, %v772_v21, 0.0  ;;  %v752_v20 = vadd.f32 %v746_v26, %v692_v2  ;;  %v753_v60 = vadd.f32 %v747_v41, %v693_v3 }
 0x174   : > { %v806_v62 = vmul.f32 %v1758_v1, %v788_v12  ;;  %v807_v49 = vmul.f32 %v1758_v1, %v789_v33  ;;  %vm2014_vm7 = vcmp.eq.s32.totalorder %v903_v32, 1  ;;  %vm2024_vm6 = vcmp.eq.s32.totalorder %v964_v17, 1 }
 0x175   : > { %v825_v38 = vpop.permute.xlu1 %824  ;;  %v881_v18 = vpop.permute.xlu0 %880  ;;  %vm2377_vm13 = vcmp.lt.s32.totalorder %v1852_v46, 112  ;;  %v503_v36 = vmul.f32 %v1698_v47, %v1746_v63 }
 0x176   : > { %v829_v59 = vsel %vm2321_vm10, %v819_v44, %v825_v38  ;;  %v832_v16 = vsel %vm2321_vm10, %v825_v38, %v819_v44  ;;  %v812_v37 = vadd.f32 %v806_v62, %v752_v20  ;;  %v813_v43 = vadd.f32 %v807_v49, %v753_v60  ;;  %vm2378_vm0 = vmmov %vm2377_vm13 }
 0x177   : > { %v850_v1 = vsel %vm1972_vm1, %v829_v59, 0.0  ;;  %v851_v23 = vsel %vm1979_vm3, %v832_v16, 0.0  ;;  %vm2020_vm10 = vcmp.eq.s32.totalorder %v960_v4, 1  ;;  %vm2379_vm3 = vcmp.lt.s32.totalorder %v1852_v46, 111 }
 0x178   : > { %v868_v57 = vmul.f32 %v1776_v8, %v850_v1  ;;  %v869_v44 = vmul.f32 %v1776_v8, %v851_v23  ;;  %vm2380_vm1 = vmmov %vm2379_vm3 }
 0x179   : > { %v887_v26 = vpop.permute.xlu1 %886  ;;  %v947_v12 = vpop.permute.xlu0 %946 }
 0x17a   : > { %v874_v33 = vadd.f32 %v868_v57, %v812_v37  ;;  %v875_v54 = vadd.f32 %v869_v44, %v813_v43  ;;  %v891_v32 = vsel %vm2377_vm13, %v881_v18, %v887_v26  ;;  %v894_v2 = vsel %vm2378_vm0, %v887_v26, %v881_v18 }
 0x17b   : > { %v910_v8 = vsel %vm2010_vm5, %v891_v32, 0.0  ;;  %v911_v3 = vsel %vm2014_vm7, %v894_v2, 0.0  ;;  %v951_v62 = vsel %vm2379_vm3, %v1849_v39, %v947_v12  ;;  %v954_v49 = vsel %vm2380_vm1, %v947_v12, %v1849_v39 }
 0x17c   : > { %v928_v38 = vmul.f32 %v1795_v11, %v910_v8  ;;  %v929_v4 = vmul.f32 %v1795_v11, %v911_v3  ;;  %v971_v18 = vsel %vm2020_vm10, %v951_v62, 0.0  ;;  %v972_v17 = vsel %vm2024_vm6, %v954_v49, 0.0 }
 0x17d   : > { %v815_v20 = vpop.permute.xlu1 %814  ;;  %v508_v60 = vpop.permute.xlu0 %507  ;;  %v989_v1 = vmul.f32 %v1810_v15, %v971_v18  ;;  %v990_v23 = vmul.f32 %v1810_v15, %v972_v17  ;;  %vm2381_vm13 = vcmp.lt.s32.totalorder %v1852_v46, 17  ;;  %vm2383_vm0 = vcmp.lt.s32.totalorder %v1852_v46, 16 }
 0x17e   : > { %v934_v59 = vadd.f32 %v928_v38, %v874_v33  ;;  %v935_v16 = vadd.f32 %v929_v4, %v875_v54  ;;  %vm2382_vm1 = vmmov %vm2381_vm13 }
 0x17f   : > { %vm2384_vm3 = vmmov %vm2383_vm0 }
 0x180   : > { %v995_v37 = vadd.f32 %v989_v1, %v934_v59  ;;  %v996_v39 = vadd.f32 %v990_v23, %v935_v16 }
 0x181   : > { %v2050_v43 = vpop.permute.xlu1 %876  ;;  %v573_v57 = vpop.permute.xlu0 %572 }
 0x182   : > { %v1019_v11 = vadd.f32 %v1820_v19, %v995_v37  ;;  %v1020_v44 = vadd.f32 %v1820_v19, %v996_v39 }
 0x184   : > { %v1026_v26 = vmax.f32 %v1020_v44, 0.0  ;;  %v1025_v12 = vmax.f32 %v1019_v11, 0.0 }
 0x185   : > { %v2054_v32 = vpop.permute.xlu1 %936  ;;  %v633_v2 = vpop.permute.xlu0 %632 }
 0x186   : > { %v1032_v33 = vmin.f32 %v1026_v26, 6.0  ;;  %v1031_v54 = vmin.f32 %v1025_v12, 6.0 }
 0x188   : > { %1070 = vmatprep.subr.mxu1 %v1032_v33 }
 0x189   : > { %1071 = vmatpush1.msra.mxu1 %v1031_v54  ;;  %v514_v8 = vpop.permute.xlu1 %513  ;;  %v695_v15 = vpop.permute.xlu0 %694 }
 0x18a   : > { %v522_v3 = vsel %vm2381_vm13, %v508_v60, %v514_v8  ;;  %v525_v62 = vsel %vm2382_vm1, %v514_v8, %v508_v60  ;;  %vm2385_vm13 = vcmp.lt.s32.totalorder %v1852_v46, 15 }
 0x18b   : > { %v542_v19 = vsel %vm1864_vm8, %v525_v62, 0.0  ;;  %v543_v4 = vsel %vm1868_vm9, %v522_v3, 0.0  ;;  %vm2386_vm1 = vmmov %vm2385_vm13 }
 0x18c   : > { %v560_v59 = vmul.f32 %v1716_v52, %v542_v19  ;;  %v561_v16 = vmul.f32 %v1716_v52, %v543_v4  ;;  %v501_v52 = vmul.f32 %v1648_v24, %v1710_v50 }
 0x18d   : > { %v579_v49 = vpop.permute.xlu1 %578  ;;  %v755_v38 = vpop.permute.xlu0 %754 }
 0x18e   : > { %v585_v18 = vsel %vm2383_vm0, %v573_v57, %v579_v49  ;;  %v588_v17 = vsel %vm2384_vm3, %v579_v49, %v573_v57  ;;  %v502_v57 = vmul.f32 %v1648_v24, %v1728_v56  ;;  %v566_v54 = vadd.f32 %v560_v59, %v501_v52 }
 0x18f   : > { %v602_v60 = vsel %vm1880_vm11, %v588_v17, 0.0  ;;  %v603_v1 = vsel %vm1887_vm12, %v585_v18, 0.0  ;;  %vm2387_vm0 = vcmp.lt.s32.totalorder %v1852_v46, 113 }
 0x190   : > { %v620_v12 = vmul.f32 %v1650_v25, %v602_v60  ;;  %v621_v33 = vmul.f32 %v1650_v25, %v603_v1  ;;  %v567_v8 = vadd.f32 %v561_v16, %v502_v57  ;;  %vm2388_vm3 = vmmov %vm2387_vm0 }
 0x191   : > { %v639_v23 = vpop.permute.xlu1 %638  ;;  %v821_v37 = vpop.permute.xlu0 %820 }
 0x192   : > { %v645_v39 = vsel %vm2385_vm13, %v633_v2, %v639_v23  ;;  %v648_v11 = vsel %vm2386_vm1, %v639_v23, %v633_v2  ;;  %v827_v2 = vsel %vm2387_vm0, %v815_v20, %v821_v37  ;;  %v830_v56 = vsel %vm2388_vm3, %v821_v37, %v815_v20 }
 0x193   : > { %v664_v44 = vsel %vm1892_vm14, %v648_v11, 0.0  ;;  %v665_v26 = vsel %vm1896_vm15, %v645_v39, 0.0  ;;  %vm2389_vm13 = vcmp.lt.s32.totalorder %v1852_v46, 1  ;;  %v626_v18 = vadd.f32 %v620_v12, %v566_v54 }
 0x194   : > { %v682_v50 = vmul.f32 %v1654_v27, %v664_v44  ;;  %v683_v62 = vmul.f32 %v1654_v27, %v665_v26  ;;  %vm2390_vm1 = vmmov %vm2389_vm13  ;;  %v627_v20 = vadd.f32 %v621_v33, %v567_v8  ;;  %vm2391_vm0 = vnez %v2366_v40 }
 0x195   : > { %v701_v3 = vpop.permute.xlu1 %700  ;;  %v575_v24 = vpop.permute.xlu0 %574  ;;  %v846_v27 = vsel %vm2391_vm0, %v827_v2, 0.0  ;;  %vm2392_vm3 = vnez %v2368_v9 }
 0x196   : > { %v707_v49 = vsel %vm2389_vm13, %v695_v15, %v701_v3  ;;  %v710_v25 = vsel %vm2390_vm1, %v701_v3, %v695_v15  ;;  %v847_v16 = vsel %vm2392_vm3, %v830_v56, 0.0  ;;  %v688_v1 = vadd.f32 %v682_v50, %v626_v18 }
 0x197   : > { %v724_v19 = vsel %vm1932_vm2, %v710_v25, 0.0  ;;  %v725_v4 = vsel %vm1936_vm4, %v707_v49, 0.0  ;;  %v689_v23 = vadd.f32 %v683_v62, %v627_v20  ;;  %vm2393_vm13 = vcmp.lt.s32.totalorder %v1852_v46, 127 }
 0x198   : > { %v742_v17 = vmul.f32 %v1656_v28, %v724_v19  ;;  %v743_v59 = vmul.f32 %v1656_v28, %v725_v4  ;;  %vm2394_vm1 = vmmov %vm2393_vm13  ;;  %vm2395_vm4 = vnez %v2362_v53  ;;  %vm2396_vm2 = vnez %v2364_v34 }
 0x199   : > { %v761_v60 = vpop.permute.xlu1 %760  ;;  %v635_v15 = vpop.permute.xlu0 %634  ;;  %v864_v12 = vmul.f32 %v1660_v30, %v846_v27  ;;  %v865_v33 = vmul.f32 %v1660_v30, %v847_v16  ;;  %vm2401_vm3 = vcmp.lt.s32.totalorder %v1852_v46, 16 }
 0x19a   : > { %v767_v37 = vsel %vm2393_vm13, %v755_v38, %v761_v60  ;;  %v770_v39 = vsel %vm2394_vm1, %v761_v60, %v755_v38  ;;  %v748_v57 = vadd.f32 %v742_v17, %v688_v1  ;;  %v749_v52 = vadd.f32 %v743_v59, %v689_v23  ;;  %vm2402_vm0 = vmmov %vm2401_vm3 }
 0x19b   : > { %v784_v11 = vsel %vm2395_vm4, %v767_v37, 0.0  ;;  %v785_v28 = vsel %vm2396_vm2, %v770_v39, 0.0  ;;  %vm2397_vm13 = vcmp.lt.s32.totalorder %v1852_v46, 112  ;;  %vm2403_vm2 = vcmp.lt.s32.totalorder %v1852_v46, 112 }
 0x19c   : > { %v802_v44 = vmul.f32 %v1658_v29, %v784_v11  ;;  %v803_v26 = vmul.f32 %v1658_v29, %v785_v28  ;;  %vm2398_vm1 = vmmov %vm2397_vm13 }
 0x19d   : > { %v883_v54 = vpop.permute.xlu1 %882  ;;  %v697_v8 = vpop.permute.xlu0 %696 }
 0x19e   : > { %v808_v2 = vadd.f32 %v802_v44, %v748_v57  ;;  %v809_v38 = vadd.f32 %v803_v26, %v749_v52  ;;  %v889_v56 = vsel %vm2397_vm13, %v2050_v43, %v883_v54  ;;  %v892_v3 = vsel %vm2398_vm1, %v883_v54, %v2050_v43 }
 0x19f   : > { %v906_v50 = vsel %vm2010_vm5, %v889_v56, 0.0  ;;  %v907_v29 = vsel %vm2014_vm7, %v892_v3, 0.0  ;;  %vm2399_vm13 = vcmp.lt.s32.totalorder %v1852_v46, 17 }
 0x1a0   : > { %v924_v30 = vmul.f32 %v1662_v31, %v906_v50  ;;  %v925_v62 = vmul.f32 %v1662_v31, %v907_v29  ;;  %v870_v49 = vadd.f32 %v864_v12, %v808_v2  ;;  %v871_v25 = vadd.f32 %v865_v33, %v809_v38  ;;  %vm2400_vm1 = vmmov %vm2399_vm13 }
 0x1a1   : > { %v510_v19 = vpop.permute.xlu1 %509  ;;  %v757_v4 = vpop.permute.xlu0 %756 }
 0x1a2   : > { %v930_v18 = vadd.f32 %v924_v30, %v870_v49  ;;  %v931_v20 = vadd.f32 %v925_v62, %v871_v25 }
 0x1a5   : > { %v879_v17 = vpop.permute.xlu1 %878  ;;  %v2132_v59 = vpop.permute.xlu0 %816 }
 0x1a9   : > { %v516_v43 = vpop.permute.xlu1 %515  ;;  %v2134_v27 = vpop.permute.xlu0 %938 }
 0x1aa   : > { %v523_v16 = vsel %vm2399_vm13, %v510_v19, %v516_v43  ;;  %v526_v60 = vsel %vm2400_vm1, %v516_v43, %v510_v19  ;;  %vm2404_vm13 = vmmov %vm2403_vm2  ;;  %vm2416_vm1 = vcmp.lt.s32.totalorder %v1852_v46, 113 }
 0x1ab   : > { %v544_v39 = vsel %vm1864_vm8, %v526_v60, 0.0  ;;  %v545_v11 = vsel %vm1868_vm9, %v523_v16, 0.0  ;;  %vm2405_vm8 = vcmp.lt.s32.totalorder %v1852_v46, 15 }
 0x1ac   : > { %v562_v12 = vmul.f32 %v1808_v14, %v544_v39  ;;  %v563_v33 = vmul.f32 %v1808_v14, %v545_v11  ;;  %vm2406_vm9 = vmmov %vm2405_vm8 }
 0x1ad   : > { %v581_v1 = vpop.permute.xlu1 %580  ;;  %v885_v31 = vpop.permute.xlu0 %884 }
 0x1ae   : > { %v586_v23 = vsel %vm2401_vm3, %v575_v24, %v581_v1  ;;  %v589_v37 = vsel %vm2402_vm0, %v581_v1, %v575_v24  ;;  %v890_v28 = vsel %vm2403_vm2, %v879_v17, %v885_v31  ;;  %v893_v57 = vsel %vm2404_vm13, %v885_v31, %v879_v17  ;;  %vm2417_vm13 = vmmov %vm2416_vm1 }
 0x1af   : > { %v908_v52 = vsel %vm2010_vm5, %v890_v28, 0.0  ;;  %v909_v44 = vsel %vm2014_vm7, %v893_v57, 0.0  ;;  %v604_v24 = vsel %vm1880_vm11, %v589_v37, 0.0  ;;  %v605_v6 = vsel %vm1887_vm12, %v586_v23, 0.0 }
 0x1b0   : > { %vm2407_vm11 = vcmp.lt.s32.totalorder %v1852_v46, 111  ;;  %v622_v2 = vmul.f32 %v1722_v55, %v604_v24  ;;  %v623_v38 = vmul.f32 %v1722_v55, %v605_v6  ;;  %v568_v50 = vadd.f32 %v562_v12, %v503_v36  ;;  %v2421_v6 = vld [vmem:[#allocation12_spill] sm:$0xff] }
 0x1b1   : > { %v641_v10 = vpop.permute.xlu1 %640  ;;  %v943_v26 = vpop.permute.xlu0 %942  ;;  %vm2408_vm12 = vmmov %vm2407_vm11  ;;  %v569_v29 = vadd.f32 %v563_v33, %v504_v22  ;;  %vm2409_vm2 = vcmp.lt.s32.totalorder %v1852_v46, 1  ;;  %vm2411_vm7 = vnez %v2358_v45  ;;  %vm2415_vm3 = vnez %v2364_v34 }
 0x1b2   : > { %v646_v54 = vsel %vm2405_vm8, %v635_v15, %v641_v10  ;;  %v649_v61 = vsel %vm2406_vm9, %v641_v10, %v635_v15  ;;  %v949_v48 = vsel %vm2407_vm11, %v2054_v32, %v943_v26  ;;  %v952_v14 = vsel %vm2408_vm12, %v943_v26, %v2054_v32  ;;  %vm2410_vm5 = vmmov %vm2409_vm2 }
 0x1b3   : > { %v967_v15 = vsel %vm2020_vm10, %v949_v48, 0.0  ;;  %v968_v63 = vsel %vm2024_vm6, %v952_v14, 0.0  ;;  %v666_v47 = vsel %vm1892_vm14, %v649_v61, 0.0  ;;  %v667_v7 = vsel %vm1896_vm15, %v646_v54, 0.0  ;;  %vm2422_vm9 = vmmov %vm2407_vm11 }
 0x1b4   : > { %v985_v56 = vmul.f32 %v1838_v35, %v967_v15  ;;  %v986_v32 = vmul.f32 %v1838_v35, %v968_v63  ;;  %vm2412_vm14 = vnez %v2360_v13  ;;  %v684_v25 = vmul.f32 %v1734_v58, %v666_v47  ;;  %vm2423_vm11 = vmmov %vm2422_vm9 }
 0x1b5   : > { %v703_v3 = vpop.permute.xlu1 %702  ;;  %v685_v35 = vmul.f32 %v1734_v58, %v667_v7  ;;  %v628_v19 = vadd.f32 %v622_v2, %v568_v50  ;;  %v629_v17 = vadd.f32 %v623_v38, %v569_v29  ;;  %vm2413_vm15 = vcmp.lt.s32.totalorder %v1852_v46, 127  ;;  %v2425_v38 = vld [vmem:[#allocation14_spill] sm:$0xff] }
 0x1b6   : > { %v708_v55 = vsel %vm2409_vm2, %v697_v8, %v703_v3  ;;  %v711_v30 = vsel %vm2410_vm5, %v703_v3, %v697_v8  ;;  %v991_v62 = vadd.f32 %v985_v56, %v930_v18  ;;  %v992_v49 = vadd.f32 %v986_v32, %v931_v20  ;;  %vm2414_vm0 = vmmov %vm2413_vm15 }
 0x1b7   : > { %v726_v51 = vsel %vm2411_vm7, %v711_v30, 0.0  ;;  %v727_v42 = vsel %vm2412_vm14, %v708_v55, 0.0  ;;  %v690_v58 = vadd.f32 %v684_v25, %v628_v19  ;;  %v691_v20 = vadd.f32 %v685_v35, %v629_v17  ;;  %v1033_v55 = vld [vmem:[%s2303_s6] sm:$0xff]  ;;  %v2427_v19 = vld [vmem:[#allocation10_spill] sm:$0xff] }
 0x1b8   : > { %v744_v16 = vmul.f32 %v1752_v0, %v726_v51  ;;  %v745_v60 = vmul.f32 %v1752_v0, %v727_v42  ;;  %vm2419_vm8 = vnez %v2368_v9  ;;  %v926_v10 = vmul.f32 %v2421_v6, %v908_v52 }
 0x1b9   : > { %v763_v43 = vpop.permute.xlu1 %762  ;;  %v927_v26 = vmul.f32 %v2421_v6, %v909_v44  ;;  %v2424_v44 = vld [vmem:[#allocation13_spill] sm:$0xff] }
 0x1ba   : > { %v768_v45 = vsel %vm2413_vm15, %v757_v4, %v763_v43  ;;  %v771_v13 = vsel %vm2414_vm0, %v763_v43, %v757_v4  ;;  %v750_v0 = vadd.f32 %v744_v16, %v690_v58  ;;  %v751_v37 = vadd.f32 %v745_v60, %v691_v20 }
 0x1bb   : > { %v786_v8 = vsel %vm2395_vm4, %v768_v45, 0.0  ;;  %v787_v18 = vsel %vm2415_vm3, %v771_v13, 0.0  ;;  %vm2418_vm4 = vnez %v2366_v40 }
 0x1bc   : > { %v804_v1 = vmul.f32 %v1768_v5, %v786_v8  ;;  %v805_v31 = vmul.f32 %v1768_v5, %v787_v18  ;;  %v2420_v5 = vld [vmem:[#allocation11_spill] sm:$0xff] }
 0x1bd   : > { %v823_v23 = vpop.permute.xlu1 %822 }
 0x1be   : > { %v828_v39 = vsel %vm2416_vm1, %v2132_v59, %v823_v23  ;;  %v831_v53 = vsel %vm2417_vm13, %v823_v23, %v2132_v59  ;;  %v810_v11 = vadd.f32 %v804_v1, %v750_v0  ;;  %v811_v28 = vadd.f32 %v805_v31, %v751_v37  ;;  %v345_v30 = vpop.permute.xlu0 %344 }
 0x1bf   : > { %v848_v34 = vsel %vm2418_vm4, %v828_v39, 0.0  ;;  %v849_v4 = vsel %vm2419_vm8, %v831_v53, 0.0  ;;  %v444_v17 = vadd.f32 %v2427_v19, %v345_v30 }
 0x1c0   : > { %v866_v57 = vmul.f32 %v2420_v5, %v848_v34  ;;  %v867_v24 = vmul.f32 %v2420_v5, %v849_v4 }
 0x1c1   : > { %v945_v12 = vpop.permute.xlu1 %944 }
 0x1c2   : > { %v872_v33 = vadd.f32 %v866_v57, %v810_v11  ;;  %v873_v54 = vadd.f32 %v867_v24, %v811_v28  ;;  %v950_v40 = vsel %vm2422_vm9, %v2134_v27, %v945_v12  ;;  %v953_v9 = vsel %vm2423_vm11, %v945_v12, %v2134_v27 }
 0x1c3   : > { %v969_v59 = vsel %vm2020_vm10, %v950_v40, 0.0  ;;  %v970_v61 = vsel %vm2024_vm6, %v953_v9, 0.0  ;;  %vm1040_vm10 = vcmask 195584   ;;  %vm1123_vm6 = vcmask 916480  }
 0x1c4   : > { %v932_v52 = vadd.f32 %v926_v10, %v872_v33  ;;  %v933_v36 = vadd.f32 %v927_v26, %v873_v54  ;;  %v987_v22 = vmul.f32 %v2424_v44, %v969_v59  ;;  %v988_v48 = vmul.f32 %v2424_v44, %v970_v61 }
 0x1c6   : > { %v993_v14 = vadd.f32 %v987_v22, %v932_v52  ;;  %v994_v2 = vadd.f32 %v988_v48, %v933_v36 }
 0x1c8   : > { %v1017_v15 = vadd.f32 %v2425_v38, %v993_v14  ;;  %v1018_v63 = vadd.f32 %v2425_v38, %v994_v2 }
 0x1ca   : > { %v1024_v46 = vmax.f32 %v1018_v63, 0.0  ;;  %v1023_v27 = vmax.f32 %v1017_v15, 0.0 }
 0x1cc   : > { %v1030_v47 = vmin.f32 %v1024_v46, 6.0  ;;  %v1029_v41 = vmin.f32 %v1023_v27, 6.0 }
 0x1ce   : > { %v1003_v7 = vpop.permute.xlu1 %1002  ;;  %1072 = vmatprep.subr.mxu1 %v1030_v47 }
 0x1cf   : > { %v1015_v21 = vadd.f32 %v1003_v7, %v991_v62  ;;  %v1016_v56 = vadd.f32 %v1003_v7, %v992_v49  ;;  %1073 = vmatpush1.msra.mxu1 %v1029_v41  ;;  %v2426_v62 = vld [vmem:[#allocation9_spill] sm:$0xff] }
 0x1d0   : > { %v442_v49 = vadd.f32 %v2426_v62, %v345_v30 }
 0x1d1   : > { %v1021_v32 = vmax.f32 %v1015_v21, 0.0  ;;  %v1022_v3 = vmax.f32 %v1016_v56, 0.0 }
 0x1d2   : > { %v1038_v51 = vpop.permute.xlu1 %1037 }
 0x1d3   : > { %v1027_v50 = vmin.f32 %v1021_v32, 6.0  ;;  %v1028_v29 = vmin.f32 %v1022_v3, 6.0 }
 0x1d5   : > { %1074 = vmatprep.subr.mxu1 %v1028_v29 }
 0x1d6   : > { %1075 = vmatpush1.msra.mxu1 %v1027_v50 }
 0x1d7   : > { %1240 = vmatmul.mubr.msk.f32.vlgmr.msra.gmra.mxu1 %vm1040_vm10, %v1033_v55 }
 0x297   : > { %v1110_v42 = vpop.f32.mrf.mxu1 }
 0x298   : > { %v1111_v25 = vadd.f32 %v1110_v42, %v1038_v51 }
 0x299   : > { %v1112_v35 = vpop.f32.mrf.mxu1 }
 0x29a   : > { %v1115_v43 = vadd.f32 %v1111_v25, %v442_v49  ;;  %v1113_v16 = vadd.f32 %v1112_v35, %v1038_v51 }
 0x29c   : > { %v1116_v60 = vadd.f32 %v1113_v16, %v444_v17  ;;  %1119 = vrot.lane.b32.xlu0 %v1115_v43, %s1468_s25 }
 0x29e   : > { %1121 = vrot.lane.b32.xlu1 %v1116_v60, %s1468_s25  ;;  %s1128_s25 = scalar_lea.sflag [#allocation3], %s320_s16 }
 0x30e   : > { %v1120_v45 = vpop.permute.xlu0 %1119 }
 0x310   : > { %v1122_v13 = vpop.permute.xlu1 %1121 }
 0x311   : > { %v1124_v8 = vsel %vm1123_vm6, %v1120_v45, %v1122_v13 }
 0x312   : > { %1126 = vst [vmem:[%s322_s20] sm:$0xff] %v1124_v8 }
 0x313   : > { %1370 = shalt.err (!%p1367_p7)
}
 0x314   : > { %s1371_s14 = scalar_lea.hbm %s2251_s24, 128  ;;  %s1375_s15 = scalar_lea.hbm %s2305_s8, 512 }
 0x315   : > { %p1372_p9 = scmp.ne.s32.totalorder %s2251_s24, %s1371_s14  ;;  %p1376_p12 = scmp.lt.s32.totalorder %s2251_s24, %s2305_s8 }
 0x316   : > { %p1377_p13 = scmp.lt.s32.totalorder %s1375_s15, %s1371_s14 }
 0x317   : > { %p1373_p10 = pnand %p1372_p9, %p1566_p3 }
 0x318   : > { %p1378_p0 = por %p1377_p13, %p1376_p12 }
 0x319   : > { %p1374_p11 = pneg %p1373_p10 }
 0x31b   : > { %p1379_p1 = pnand %p1378_p0, %p1374_p11 }
 0x31d   : > { %1382 = shalt.err (!%p1379_p1)
}
 0x31e   : > { %1248 = dma.vmem_to_hbm [thread:$0]  (%p1566_p3), %s1144_s21, 128, %s2251_s24, %s1128_s25  }
 0x31f PF: > { %p1254_p2 = scmp.ge.s32.totalorder %s1449_s12, 2  ;;  %s1155_s22 = sand.u32 1, %s1421_s27  }
 0x320   : > { %s1156_s11 = scalar_lea.sflag [#allocation3], %s1155_s22 }
 0x321   : > { %p1251_p4 = pnand %p1254_p2, %p1575_p8 }
 0x323   : > { %p1252_p5 = pneg %p1251_p4 }
 0x325   : > { %1416 = dma.done.wait (%p1252_p5), %s1156_s11, 128  }
 0x326   : > { %1418 = vsyncadd (%p1252_p5), %s1156_s11, 4294967168  ;;  %s21_s12 = sadd.s32 1, %s1449_s12   ;;  %s2428_s30 = sld [smem:[#allocation5_spill]] }
 0x327   : > { %p18_p6 = scmp.ge.s32.totalorder %s21_s12, 6   ;;  %s2429_s9 = sld [smem:[#allocation6_spill]] }
 0x328   : > { %s2430_s10 = sld [smem:[#allocation7_spill]]  ;;  %s2432_s27 = smov %s1425_s28 }
 0x329   : > { %s2431_s11 = sld [smem:[#allocation8_spill]]  ;;  %s2433_s28 = smov %s1429_s29 }
 0x32a   : > { %s2434_s29 = smov %s1584_s23  ;;  %20 = sbr.rel (!%p18_p6) target bundleno = 5 (0x5), region = 88 }
 0x32f   :  { %1161 = vsyncpa [#allocation3], 1 }
 0x330   :  { %1163 = vsyncpa [#allocation3 + $0x1], 1 }

</bundles_post_ra>
